<compile_context>
chip_gen: v5e
topology: v5e:2x2
jax: 0.10.0
libtpu: 0.0.40
codegen_flags: <defaults>
</compile_context>

<pallas_src>
import numpy as np

import jax
import jax.numpy as jnp
from jax.experimental import pallas as pl
from jax.experimental.pallas import tpu as pltpu


# ---------------------------------------------------------------------------
# Fused LeNet kernel (one batch element per grid step)
# ---------------------------------------------------------------------------
def _lenet_kernel(x_ref, t1_ref, b1_ref, s1_ref, t2_ref, b2_ref, s2_ref,
                  wf1_ref, bf1_ref, wf2_ref, bf2_ref, wf3_ref, bf3_ref,
                  out_ref):
    f32 = jnp.float32
    x = x_ref[0]                                            # (28, 28)

    # ---- conv1 (1->6, 5x5, valid) + bias + ReLU, via 5 banded matmuls ------
    # acc1[y, L] with L = (x%2)*128 + (x//2)*6 + c   (lanes 72..127 / 200..255 are 0)
    acc1 = jnp.zeros((24, 256), f32)
    for i in range(5):
        acc1 = acc1 + jnp.dot(x[i:i + 24, :], t1_ref[i],
                              preferred_element_type=f32)
    acc1 = jnp.maximum(acc1 + b1_ref[...], 0.0)

    # ---- 2x2 max-pool: rows via selection matmuls, cols via lane-tile halves
    v = jnp.maximum(jnp.dot(s1_ref[0], acc1, preferred_element_type=f32),
                    jnp.dot(s1_ref[1], acc1, preferred_element_type=f32))
    p1 = jnp.maximum(v[:, :128], v[:, 128:])                # (12, 128): lane = x*6 + c

    # ---- conv2 (6->16, 5x5, valid) + bias + ReLU ---------------------------
    acc2 = jnp.zeros((8, 256), f32)
    for i in range(5):
        acc2 = acc2 + jnp.dot(p1[i:i + 8, :], t2_ref[i],
                              preferred_element_type=f32)
    acc2 = jnp.maximum(acc2 + b2_ref[...], 0.0)

    v2 = jnp.maximum(jnp.dot(s2_ref[0], acc2, preferred_element_type=f32),
                     jnp.dot(s2_ref[1], acc2, preferred_element_type=f32))
    p2 = jnp.maximum(v2[:, :128], v2[:, 128:])              # (4, 128): lane = w*16 + co

    # ---- fc1 (256->120, padded to 128 lanes) + ReLU ------------------------
    # NCHW flatten is folded in: one matmul per pooled row, no in-kernel reshape.
    wf1 = wf1_ref[...]                                      # (512, 128)
    h1 = bf1_ref[...]                                       # (1, 128)
    for r in range(4):
        h1 = h1 + jnp.dot(p2[r:r + 1, :], wf1[r * 128:(r + 1) * 128, :],
                          preferred_element_type=f32)
    h1 = jnp.maximum(h1, 0.0)

    # ---- fc2 (120->84, padded) + ReLU --------------------------------------
    h2 = jnp.maximum(
        jnp.dot(h1, wf2_ref[...], preferred_element_type=f32) + bf2_ref[...],
        0.0)

    # TODO(synk): nn.Dropout(0.5) implemented as identity (eval semantics);
    #             training-mode random masking/scaling is omitted.

    # ---- fc3 (84->10, padded to 128 output lanes) --------------------------
    out_ref[0] = (jnp.dot(h2, wf3_ref[...], preferred_element_type=f32)
                  + bf3_ref[...])


# ---------------------------------------------------------------------------
# Host-side, one-time repack of PyTorch-layout weights into kernel layouts
# ---------------------------------------------------------------------------
def prepare_params(params):
    p = {k: np.asarray(v, np.float32) for k, v in params.items()}

    # conv1 banded matrices T1[i]: (28, 256).  Output lane L = (x%2)*128 + (x//2)*6 + c.
    w1 = p["conv1_w"][:, 0]                                 # (6, 5, 5) [c, i, j]
    t1 = np.zeros((5, 28, 24, 6), np.float32)               # [i, xp, x, c]
    for i in range(5):
        for j in range(5):
            for x in range(24):
                t1[i, x + j, x, :] = w1[:, i, j]
    T1 = np.zeros((5, 28, 256), np.float32)
    T1[:, :, 0:72] = t1[:, :, 0::2, :].reshape(5, 28, 72)    # even x block
    T1[:, :, 128:200] = t1[:, :, 1::2, :].reshape(5, 28, 72)  # odd x block
    B1 = np.zeros((1, 256), np.float32)
    B1[0, 0:72] = np.tile(p["conv1_b"], 12)
    B1[0, 128:200] = np.tile(p["conv1_b"], 12)

    # conv2 banded matrices T2[i]: (128, 256).  Input row = x'*6 + ci (x' < 12),
    # output lane L2 = (x2%2)*128 + (x2//2)*16 + co.
    w2 = p["conv2_w"]                                       # (16, 6, 5, 5) [co, ci, i, j]
    t2 = np.zeros((5, 12, 6, 8, 16), np.float32)            # [i, xp, ci, x2, co]
    for i in range(5):
        for j in range(5):
            for x2 in range(8):
                t2[i, x2 + j, :, x2, :] = w2[:, :, i, j].T   # (ci, co)
    t2 = t2.reshape(5, 72, 8, 16)
    T2 = np.zeros((5, 128, 256), np.float32)
    T2[:, :72, 0:64] = t2[:, :, 0::2, :].reshape(5, 72, 64)   # even x2 block
    T2[:, :72, 128:192] = t2[:, :, 1::2, :].reshape(5, 72, 64)  # odd x2 block
    B2 = np.zeros((1, 256), np.float32)
    B2[0, 0:64] = np.tile(p["conv2_b"], 4)
    B2[0, 128:192] = np.tile(p["conv2_b"], 4)

    # Row-pair selection matrices (vertical direction of the 2x2 max-pool).
    S1 = np.zeros((2, 12, 24), np.float32)
    S1[0, np.arange(12), 2 * np.arange(12)] = 1.0
    S1[1, np.arange(12), 2 * np.arange(12) + 1] = 1.0
    S2 = np.zeros((2, 4, 8), np.float32)
    S2[0, np.arange(4), 2 * np.arange(4)] = 1.0
    S2[1, np.arange(4), 2 * np.arange(4) + 1] = 1.0

    # fc1: PyTorch flat index k = c*16 + h*4 + w  ->  kernel index h*128 + w*16 + c.
    fc1_w = p["fc1_w"]                                      # (120, 256)
    Wf1 = np.zeros((4, 128, 128), np.float32)               # [h, lane, n]
    for h in range(4):
        for w in range(4):
            for c in range(16):
                Wf1[h, w * 16 + c, :120] = fc1_w[:, c * 16 + h * 4 + w]
    Wf1 = Wf1.reshape(512, 128)
    Bf1 = np.zeros((1, 128), np.float32)
    Bf1[0, :120] = p["fc1_b"]

    Wf2 = np.zeros((128, 128), np.float32)
    Wf2[:120, :84] = p["fc2_w"].T
    Bf2 = np.zeros((1, 128), np.float32)
    Bf2[0, :84] = p["fc2_b"]

    Wf3 = np.zeros((128, 128), np.float32)
    Wf3[:84, :10] = p["fc3_w"].T
    Bf3 = np.zeros((1, 128), np.float32)
    Bf3[0, :10] = p["fc3_b"]

    names = ["T1", "B1", "S1", "T2", "B2", "S2",
             "Wf1", "Bf1", "Wf2", "Bf2", "Wf3", "Bf3"]
    vals = [T1, B1, S1, T2, B2, S2, Wf1, Bf1, Wf2, Bf2, Wf3, Bf3]
    return {k: jnp.asarray(v) for k, v in zip(names, vals)}


# ---------------------------------------------------------------------------
# Forward pass: one pallas_call, grid over batch ("parallel")
# ---------------------------------------------------------------------------
def lenet_forward(x_nchw, prep):
    B = x_nchw.shape[0]
    x = x_nchw.reshape(B, 28, 28)                            # C=1 -> drop channel dim

    out = pl.pallas_call(
        _lenet_kernel,
        out_shape=jax.ShapeDtypeStruct((B, 1, 128), jnp.float32),
        grid=(B,),
        in_specs=[
            pl.BlockSpec((1, 28, 28), lambda b: (b, 0, 0)),     # per-sample image
            pl.BlockSpec((5, 28, 256), lambda b: (0, 0, 0)),    # T1
            pl.BlockSpec((1, 256), lambda b: (0, 0)),           # B1
            pl.BlockSpec((2, 12, 24), lambda b: (0, 0, 0)),     # S1
            pl.BlockSpec((5, 128, 256), lambda b: (0, 0, 0)),   # T2
            pl.BlockSpec((1, 256), lambda b: (0, 0)),           # B2
            pl.BlockSpec((2, 4, 8), lambda b: (0, 0, 0)),       # S2
            pl.BlockSpec((512, 128), lambda b: (0, 0)),         # Wf1
            pl.BlockSpec((1, 128), lambda b: (0, 0)),           # Bf1
            pl.BlockSpec((128, 128), lambda b: (0, 0)),         # Wf2
            pl.BlockSpec((1, 128), lambda b: (0, 0)),           # Bf2
            pl.BlockSpec((128, 128), lambda b: (0, 0)),         # Wf3
            pl.BlockSpec((1, 128), lambda b: (0, 0)),           # Bf3
        ],
        out_specs=pl.BlockSpec((1, 1, 128), lambda b: (b, 0, 0)),
        compiler_params=pltpu.CompilerParams(
            dimension_semantics=("parallel",)),
    )(x, prep["T1"], prep["B1"], prep["S1"], prep["T2"], prep["B2"], prep["S2"],
      prep["Wf1"], prep["Bf1"], prep["Wf2"], prep["Bf2"], prep["Wf3"], prep["Bf3"])

    return out.reshape(B, 128)[:, :10]


# ---------------------------------------------------------------------------
# Pure-JAX reference (for a built-in correctness check)
# ---------------------------------------------------------------------------
def lenet_reference(x_nchw, params):
    hi = jax.lax.Precision.HIGHEST
    x = jax.lax.conv_general_dilated(
        x_nchw, params["conv1_w"], (1, 1), "VALID",
        dimension_numbers=("NCHW", "OIHW", "NCHW"), precision=hi)
    x = jax.nn.relu(x + params["conv1_b"][None, :, None, None])
    x = jax.lax.reduce_window(x, -jnp.inf, jax.lax.max,
                              (1, 1, 2, 2), (1, 1, 2, 2), "VALID")
    x = jax.lax.conv_general_dilated(
        x, params["conv2_w"], (1, 1), "VALID",
        dimension_numbers=("NCHW", "OIHW", "NCHW"), precision=hi)
    x = jax.nn.relu(x + params["conv2_b"][None, :, None, None])
    x = jax.lax.reduce_window(x, -jnp.inf, jax.lax.max,
                              (1, 1, 2, 2), (1, 1, 2, 2), "VALID")
    x = x.reshape(x.shape[0], 256)
    x = jax.nn.relu(jnp.dot(x, params["fc1_w"].T, precision=hi) + params["fc1_b"])
    x = jax.nn.relu(jnp.dot(x, params["fc2_w"].T, precision=hi) + params["fc2_b"])
    return jnp.dot(x, params["fc3_w"].T, precision=hi) + params["fc3_b"]


# ---------------------------------------------------------------------------
# Parameters (deterministic synthetic init, PyTorch shapes)
# ---------------------------------------------------------------------------
def init_params(key):
    ks = jax.random.split(key, 10)

    def rnd(k, shape, fan_in):
        return jax.random.normal(k, shape, jnp.float32) / jnp.sqrt(float(fan_in))

    return {
        "conv1_w": rnd(ks[0], (6, 1, 5, 5), 25),
        "conv1_b": rnd(ks[1], (6,), 25),
        "conv2_w": rnd(ks[2], (16, 6, 5, 5), 150),
        "conv2_b": rnd(ks[3], (16,), 150),
        "fc1_w":   rnd(ks[4], (120, 256), 256),
        "fc1_b":   rnd(ks[5], (120,), 256),
        "fc2_w":   rnd(ks[6], (84, 120), 120),
        "fc2_b":   rnd(ks[7], (84,), 120),
        "fc3_w":   rnd(ks[8], (10, 84), 84),
        "fc3_b":   rnd(ks[9], (10,), 84),
    }


# ---------------------------------------------------------------------------
# Main
# ---------------------------------------------------------------------------
if __name__ == "__main__":
    key = jax.random.PRNGKey(0)
    k_param, k_input = jax.random.split(key)

    params = init_params(k_param)
    prep = prepare_params(params)       # one-time host-side weight repack

    # LeNet's fc1 (4*4*16) pins the spatial size to 28x28, 1 channel.
    x = jax.random.normal(k_input, (2, 1, 28, 28), jnp.float32)

    out = jax.jit(lenet_forward)(x, prep)
    out = jax.block_until_ready(out)

    assert out.shape == (2, 10), out.shape
    assert out.dtype == jnp.float32

    ref = jax.block_until_ready(jax.jit(lenet_reference)(x, params))
    np.testing.assert_allclose(np.asarray(out), np.asarray(ref),
                               atol=2e-2, rtol=2e-2)

    print("KERNEL_OK")
</pallas_src>

<mosaic_0001>
module attributes {stable_mosaic.version = 11 : i64} {
  func.func @_lenet_kernel(%arg0: i32, %arg1: memref<1x28x28xf32, #tpu.memory_space<vmem>>, %arg2: memref<5x28x256xf32, #tpu.memory_space<vmem>>, %arg3: memref<1x256xf32, #tpu.memory_space<vmem>>, %arg4: memref<2x12x24xf32, #tpu.memory_space<vmem>>, %arg5: memref<5x128x256xf32, #tpu.memory_space<vmem>>, %arg6: memref<1x256xf32, #tpu.memory_space<vmem>>, %arg7: memref<2x4x8xf32, #tpu.memory_space<vmem>>, %arg8: memref<512x128xf32, #tpu.memory_space<vmem>>, %arg9: memref<1x128xf32, #tpu.memory_space<vmem>>, %arg10: memref<128x128xf32, #tpu.memory_space<vmem>>, %arg11: memref<1x128xf32, #tpu.memory_space<vmem>>, %arg12: memref<128x128xf32, #tpu.memory_space<vmem>>, %arg13: memref<1x128xf32, #tpu.memory_space<vmem>>, %arg14: memref<1x1x128xf32, #tpu.memory_space<vmem>>) attributes {dimension_semantics = [#tpu.dimension_semantics<parallel>], iteration_bounds = array<i64: 2>, scalar_prefetch = 0 : i64, scratch_operands = 0 : i64, tpu.core_type = #tpu.core_type<tc>, window_params = [{transform_indices = @transform_0, window_bounds = array<i64: 1, 28, 28>}, {pipeline_mode = #tpu.pipeline_mode<synchronous>, transform_indices = @transform_1, window_bounds = array<i64: 5, 28, 256>}, {pipeline_mode = #tpu.pipeline_mode<synchronous>, transform_indices = @transform_2, window_bounds = array<i64: 1, 256>}, {pipeline_mode = #tpu.pipeline_mode<synchronous>, transform_indices = @transform_3, window_bounds = array<i64: 2, 12, 24>}, {pipeline_mode = #tpu.pipeline_mode<synchronous>, transform_indices = @transform_4, window_bounds = array<i64: 5, 128, 256>}, {pipeline_mode = #tpu.pipeline_mode<synchronous>, transform_indices = @transform_5, window_bounds = array<i64: 1, 256>}, {pipeline_mode = #tpu.pipeline_mode<synchronous>, transform_indices = @transform_6, window_bounds = array<i64: 2, 4, 8>}, {pipeline_mode = #tpu.pipeline_mode<synchronous>, transform_indices = @transform_7, window_bounds = array<i64: 512, 128>}, {pipeline_mode = #tpu.pipeline_mode<synchronous>, transform_indices = @transform_8, window_bounds = array<i64: 1, 128>}, {pipeline_mode = #tpu.pipeline_mode<synchronous>, transform_indices = @transform_9, window_bounds = array<i64: 128, 128>}, {pipeline_mode = #tpu.pipeline_mode<synchronous>, transform_indices = @transform_10, window_bounds = array<i64: 1, 128>}, {pipeline_mode = #tpu.pipeline_mode<synchronous>, transform_indices = @transform_11, window_bounds = array<i64: 128, 128>}, {pipeline_mode = #tpu.pipeline_mode<synchronous>, transform_indices = @transform_12, window_bounds = array<i64: 1, 128>}, {transform_indices = @transform_13, window_bounds = array<i64: 1, 1, 128>}]} {
    %c0 = arith.constant 0 : index
    %c0_0 = arith.constant 0 : index
    %c0_1 = arith.constant 0 : index
    %0 = vector.load %arg1[%c0, %c0_0, %c0_1] : memref<1x28x28xf32, #tpu.memory_space<vmem>>, vector<1x28x28xf32>
    %1 = vector.shape_cast %0 : vector<1x28x28xf32> to vector<28x28xf32>
    %cst = arith.constant 0.000000e+00 : f32
    %2 = vector.broadcast %cst : f32 to vector<24x256xf32>
    %3 = vector.extract_strided_slice %1 {offsets = [0, 0], sizes = [24, 28], strides = [1, 1]} : vector<28x28xf32> to vector<24x28xf32>
    %c0_2 = arith.constant 0 : index
    %c0_3 = arith.constant 0 : index
    %c0_4 = arith.constant 0 : index
    %4 = vector.load %arg2[%c0_2, %c0_3, %c0_4] : memref<5x28x256xf32, #tpu.memory_space<vmem>>, vector<1x28x256xf32>
    %5 = vector.shape_cast %4 : vector<1x28x256xf32> to vector<28x256xf32>
    %cst_5 = arith.constant dense<0.000000e+00> : vector<24x256xf32>
    %6 = tpu.matmul %3, %5, %cst_5 {dimension_numbers = #tpu.dot_dimension_numbers<[1], [0], [0], [1], [0, 0, 1, 1], [], []>} : vector<24x28xf32>, vector<28x256xf32>, vector<24x256xf32> -> vector<24x256xf32>
    %7 = arith.addf %2, %6 : vector<24x256xf32>
    %8 = vector.extract_strided_slice %1 {offsets = [1, 0], sizes = [24, 28], strides = [1, 1]} : vector<28x28xf32> to vector<24x28xf32>
    %c1 = arith.constant 1 : index
    %c0_6 = arith.constant 0 : index
    %c0_7 = arith.constant 0 : index
    %9 = vector.load %arg2[%c1, %c0_6, %c0_7] : memref<5x28x256xf32, #tpu.memory_space<vmem>>, vector<1x28x256xf32>
    %10 = vector.shape_cast %9 : vector<1x28x256xf32> to vector<28x256xf32>
    %cst_8 = arith.constant dense<0.000000e+00> : vector<24x256xf32>
    %11 = tpu.matmul %8, %10, %cst_8 {dimension_numbers = #tpu.dot_dimension_numbers<[1], [0], [0], [1], [0, 0, 1, 1], [], []>} : vector<24x28xf32>, vector<28x256xf32>, vector<24x256xf32> -> vector<24x256xf32>
    %12 = arith.addf %7, %11 : vector<24x256xf32>
    %13 = vector.extract_strided_slice %1 {offsets = [2, 0], sizes = [24, 28], strides = [1, 1]} : vector<28x28xf32> to vector<24x28xf32>
    %c2 = arith.constant 2 : index
    %c0_9 = arith.constant 0 : index
    %c0_10 = arith.constant 0 : index
    %14 = vector.load %arg2[%c2, %c0_9, %c0_10] : memref<5x28x256xf32, #tpu.memory_space<vmem>>, vector<1x28x256xf32>
    %15 = vector.shape_cast %14 : vector<1x28x256xf32> to vector<28x256xf32>
    %cst_11 = arith.constant dense<0.000000e+00> : vector<24x256xf32>
    %16 = tpu.matmul %13, %15, %cst_11 {dimension_numbers = #tpu.dot_dimension_numbers<[1], [0], [0], [1], [0, 0, 1, 1], [], []>} : vector<24x28xf32>, vector<28x256xf32>, vector<24x256xf32> -> vector<24x256xf32>
    %17 = arith.addf %12, %16 : vector<24x256xf32>
    %18 = vector.extract_strided_slice %1 {offsets = [3, 0], sizes = [24, 28], strides = [1, 1]} : vector<28x28xf32> to vector<24x28xf32>
    %c3 = arith.constant 3 : index
    %c0_12 = arith.constant 0 : index
    %c0_13 = arith.constant 0 : index
    %19 = vector.load %arg2[%c3, %c0_12, %c0_13] : memref<5x28x256xf32, #tpu.memory_space<vmem>>, vector<1x28x256xf32>
    %20 = vector.shape_cast %19 : vector<1x28x256xf32> to vector<28x256xf32>
    %cst_14 = arith.constant dense<0.000000e+00> : vector<24x256xf32>
    %21 = tpu.matmul %18, %20, %cst_14 {dimension_numbers = #tpu.dot_dimension_numbers<[1], [0], [0], [1], [0, 0, 1, 1], [], []>} : vector<24x28xf32>, vector<28x256xf32>, vector<24x256xf32> -> vector<24x256xf32>
    %22 = arith.addf %17, %21 : vector<24x256xf32>
    %23 = vector.extract_strided_slice %1 {offsets = [4, 0], sizes = [24, 28], strides = [1, 1]} : vector<28x28xf32> to vector<24x28xf32>
    %c4 = arith.constant 4 : index
    %c0_15 = arith.constant 0 : index
    %c0_16 = arith.constant 0 : index
    %24 = vector.load %arg2[%c4, %c0_15, %c0_16] : memref<5x28x256xf32, #tpu.memory_space<vmem>>, vector<1x28x256xf32>
    %25 = vector.shape_cast %24 : vector<1x28x256xf32> to vector<28x256xf32>
    %cst_17 = arith.constant dense<0.000000e+00> : vector<24x256xf32>
    %26 = tpu.matmul %23, %25, %cst_17 {dimension_numbers = #tpu.dot_dimension_numbers<[1], [0], [0], [1], [0, 0, 1, 1], [], []>} : vector<24x28xf32>, vector<28x256xf32>, vector<24x256xf32> -> vector<24x256xf32>
    %27 = arith.addf %22, %26 : vector<24x256xf32>
    %c0_18 = arith.constant 0 : index
    %c0_19 = arith.constant 0 : index
    %28 = vector.load %arg3[%c0_18, %c0_19] : memref<1x256xf32, #tpu.memory_space<vmem>>, vector<1x256xf32>
    %29 = vector.broadcast %28 : vector<1x256xf32> to vector<24x256xf32>
    %30 = arith.addf %27, %29 : vector<24x256xf32>
    %cst_20 = arith.constant 0.000000e+00 : f32
    %31 = vector.broadcast %cst_20 : f32 to vector<24x256xf32>
    %32 = arith.maximumf %30, %31 : vector<24x256xf32>
    %c0_21 = arith.constant 0 : index
    %c0_22 = arith.constant 0 : index
    %c0_23 = arith.constant 0 : index
    %33 = vector.load %arg4[%c0_21, %c0_22, %c0_23] : memref<2x12x24xf32, #tpu.memory_space<vmem>>, vector<1x12x24xf32>
    %34 = vector.shape_cast %33 : vector<1x12x24xf32> to vector<12x24xf32>
    %cst_24 = arith.constant dense<0.000000e+00> : vector<12x256xf32>
    %35 = tpu.matmul %34, %32, %cst_24 {dimension_numbers = #tpu.dot_dimension_numbers<[1], [0], [0], [1], [0, 0, 1, 1], [], []>} : vector<12x24xf32>, vector<24x256xf32>, vector<12x256xf32> -> vector<12x256xf32>
    %c1_25 = arith.constant 1 : index
    %c0_26 = arith.constant 0 : index
    %c0_27 = arith.constant 0 : index
    %36 = vector.load %arg4[%c1_25, %c0_26, %c0_27] : memref<2x12x24xf32, #tpu.memory_space<vmem>>, vector<1x12x24xf32>
    %37 = vector.shape_cast %36 : vector<1x12x24xf32> to vector<12x24xf32>
    %cst_28 = arith.constant dense<0.000000e+00> : vector<12x256xf32>
    %38 = tpu.matmul %37, %32, %cst_28 {dimension_numbers = #tpu.dot_dimension_numbers<[1], [0], [0], [1], [0, 0, 1, 1], [], []>} : vector<12x24xf32>, vector<24x256xf32>, vector<12x256xf32> -> vector<12x256xf32>
    %39 = arith.maximumf %35, %38 : vector<12x256xf32>
    %40 = vector.extract_strided_slice %39 {offsets = [0, 0], sizes = [12, 128], strides = [1, 1]} : vector<12x256xf32> to vector<12x128xf32>
    %41 = vector.extract_strided_slice %39 {offsets = [0, 128], sizes = [12, 128], strides = [1, 1]} : vector<12x256xf32> to vector<12x128xf32>
    %42 = arith.maximumf %40, %41 : vector<12x128xf32>
    %cst_29 = arith.constant 0.000000e+00 : f32
    %43 = vector.broadcast %cst_29 : f32 to vector<8x256xf32>
    %44 = vector.extract_strided_slice %42 {offsets = [0, 0], sizes = [8, 128], strides = [1, 1]} : vector<12x128xf32> to vector<8x128xf32>
    %c0_30 = arith.constant 0 : index
    %c0_31 = arith.constant 0 : index
    %c0_32 = arith.constant 0 : index
    %45 = vector.load %arg5[%c0_30, %c0_31, %c0_32] : memref<5x128x256xf32, #tpu.memory_space<vmem>>, vector<1x128x256xf32>
    %46 = vector.shape_cast %45 : vector<1x128x256xf32> to vector<128x256xf32>
    %cst_33 = arith.constant dense<0.000000e+00> : vector<8x256xf32>
    %47 = tpu.matmul %44, %46, %cst_33 {dimension_numbers = #tpu.dot_dimension_numbers<[1], [0], [0], [1], [0, 0, 1, 1], [], []>} : vector<8x128xf32>, vector<128x256xf32>, vector<8x256xf32> -> vector<8x256xf32>
    %48 = arith.addf %43, %47 : vector<8x256xf32>
    %49 = vector.extract_strided_slice %42 {offsets = [1, 0], sizes = [8, 128], strides = [1, 1]} : vector<12x128xf32> to vector<8x128xf32>
    %c1_34 = arith.constant 1 : index
    %c0_35 = arith.constant 0 : index
    %c0_36 = arith.constant 0 : index
    %50 = vector.load %arg5[%c1_34, %c0_35, %c0_36] : memref<5x128x256xf32, #tpu.memory_space<vmem>>, vector<1x128x256xf32>
    %51 = vector.shape_cast %50 : vector<1x128x256xf32> to vector<128x256xf32>
    %cst_37 = arith.constant dense<0.000000e+00> : vector<8x256xf32>
    %52 = tpu.matmul %49, %51, %cst_37 {dimension_numbers = #tpu.dot_dimension_numbers<[1], [0], [0], [1], [0, 0, 1, 1], [], []>} : vector<8x128xf32>, vector<128x256xf32>, vector<8x256xf32> -> vector<8x256xf32>
    %53 = arith.addf %48, %52 : vector<8x256xf32>
    %54 = vector.extract_strided_slice %42 {offsets = [2, 0], sizes = [8, 128], strides = [1, 1]} : vector<12x128xf32> to vector<8x128xf32>
    %c2_38 = arith.constant 2 : index
    %c0_39 = arith.constant 0 : index
    %c0_40 = arith.constant 0 : index
    %55 = vector.load %arg5[%c2_38, %c0_39, %c0_40] : memref<5x128x256xf32, #tpu.memory_space<vmem>>, vector<1x128x256xf32>
    %56 = vector.shape_cast %55 : vector<1x128x256xf32> to vector<128x256xf32>
    %cst_41 = arith.constant dense<0.000000e+00> : vector<8x256xf32>
    %57 = tpu.matmul %54, %56, %cst_41 {dimension_numbers = #tpu.dot_dimension_numbers<[1], [0], [0], [1], [0, 0, 1, 1], [], []>} : vector<8x128xf32>, vector<128x256xf32>, vector<8x256xf32> -> vector<8x256xf32>
    %58 = arith.addf %53, %57 : vector<8x256xf32>
    %59 = vector.extract_strided_slice %42 {offsets = [3, 0], sizes = [8, 128], strides = [1, 1]} : vector<12x128xf32> to vector<8x128xf32>
    %c3_42 = arith.constant 3 : index
    %c0_43 = arith.constant 0 : index
    %c0_44 = arith.constant 0 : index
    %60 = vector.load %arg5[%c3_42, %c0_43, %c0_44] : memref<5x128x256xf32, #tpu.memory_space<vmem>>, vector<1x128x256xf32>
    %61 = vector.shape_cast %60 : vector<1x128x256xf32> to vector<128x256xf32>
    %cst_45 = arith.constant dense<0.000000e+00> : vector<8x256xf32>
    %62 = tpu.matmul %59, %61, %cst_45 {dimension_numbers = #tpu.dot_dimension_numbers<[1], [0], [0], [1], [0, 0, 1, 1], [], []>} : vector<8x128xf32>, vector<128x256xf32>, vector<8x256xf32> -> vector<8x256xf32>
    %63 = arith.addf %58, %62 : vector<8x256xf32>
    %64 = vector.extract_strided_slice %42 {offsets = [4, 0], sizes = [8, 128], strides = [1, 1]} : vector<12x128xf32> to vector<8x128xf32>
    %c4_46 = arith.constant 4 : index
    %c0_47 = arith.constant 0 : index
    %c0_48 = arith.constant 0 : index
    %65 = vector.load %arg5[%c4_46, %c0_47, %c0_48] : memref<5x128x256xf32, #tpu.memory_space<vmem>>, vector<1x128x256xf32>
    %66 = vector.shape_cast %65 : vector<1x128x256xf32> to vector<128x256xf32>
    %cst_49 = arith.constant dense<0.000000e+00> : vector<8x256xf32>
    %67 = tpu.matmul %64, %66, %cst_49 {dimension_numbers = #tpu.dot_dimension_numbers<[1], [0], [0], [1], [0, 0, 1, 1], [], []>} : vector<8x128xf32>, vector<128x256xf32>, vector<8x256xf32> -> vector<8x256xf32>
    %68 = arith.addf %63, %67 : vector<8x256xf32>
    %c0_50 = arith.constant 0 : index
    %c0_51 = arith.constant 0 : index
    %69 = vector.load %arg6[%c0_50, %c0_51] : memref<1x256xf32, #tpu.memory_space<vmem>>, vector<1x256xf32>
    %70 = vector.broadcast %69 : vector<1x256xf32> to vector<8x256xf32>
    %71 = arith.addf %68, %70 : vector<8x256xf32>
    %cst_52 = arith.constant 0.000000e+00 : f32
    %72 = vector.broadcast %cst_52 : f32 to vector<8x256xf32>
    %73 = arith.maximumf %71, %72 : vector<8x256xf32>
    %c0_53 = arith.constant 0 : index
    %c0_54 = arith.constant 0 : index
    %c0_55 = arith.constant 0 : index
    %74 = vector.load %arg7[%c0_53, %c0_54, %c0_55] : memref<2x4x8xf32, #tpu.memory_space<vmem>>, vector<1x4x8xf32>
    %75 = vector.shape_cast %74 : vector<1x4x8xf32> to vector<4x8xf32>
    %cst_56 = arith.constant dense<0.000000e+00> : vector<4x256xf32>
    %76 = tpu.matmul %75, %73, %cst_56 {dimension_numbers = #tpu.dot_dimension_numbers<[1], [0], [0], [1], [0, 0, 1, 1], [], []>} : vector<4x8xf32>, vector<8x256xf32>, vector<4x256xf32> -> vector<4x256xf32>
    %c1_57 = arith.constant 1 : index
    %c0_58 = arith.constant 0 : index
    %c0_59 = arith.constant 0 : index
    %77 = vector.load %arg7[%c1_57, %c0_58, %c0_59] : memref<2x4x8xf32, #tpu.memory_space<vmem>>, vector<1x4x8xf32>
    %78 = vector.shape_cast %77 : vector<1x4x8xf32> to vector<4x8xf32>
    %cst_60 = arith.constant dense<0.000000e+00> : vector<4x256xf32>
    %79 = tpu.matmul %78, %73, %cst_60 {dimension_numbers = #tpu.dot_dimension_numbers<[1], [0], [0], [1], [0, 0, 1, 1], [], []>} : vector<4x8xf32>, vector<8x256xf32>, vector<4x256xf32> -> vector<4x256xf32>
    %80 = arith.maximumf %76, %79 : vector<4x256xf32>
    %81 = vector.extract_strided_slice %80 {offsets = [0, 0], sizes = [4, 128], strides = [1, 1]} : vector<4x256xf32> to vector<4x128xf32>
    %82 = vector.extract_strided_slice %80 {offsets = [0, 128], sizes = [4, 128], strides = [1, 1]} : vector<4x256xf32> to vector<4x128xf32>
    %83 = arith.maximumf %81, %82 : vector<4x128xf32>
    %c0_61 = arith.constant 0 : index
    %c0_62 = arith.constant 0 : index
    %84 = vector.load %arg8[%c0_61, %c0_62] : memref<512x128xf32, #tpu.memory_space<vmem>>, vector<512x128xf32>
    %c0_63 = arith.constant 0 : index
    %c0_64 = arith.constant 0 : index
    %85 = vector.load %arg9[%c0_63, %c0_64] : memref<1x128xf32, #tpu.memory_space<vmem>>, vector<1x128xf32>
    %86 = vector.extract_strided_slice %83 {offsets = [0, 0], sizes = [1, 128], strides = [1, 1]} : vector<4x128xf32> to vector<1x128xf32>
    %87 = vector.extract_strided_slice %84 {offsets = [0, 0], sizes = [128, 128], strides = [1, 1]} : vector<512x128xf32> to vector<128x128xf32>
    %cst_65 = arith.constant dense<0.000000e+00> : vector<1x128xf32>
    %88 = tpu.matmul %86, %87, %cst_65 {dimension_numbers = #tpu.dot_dimension_numbers<[1], [0], [0], [1], [0, 0, 1, 1], [], []>} : vector<1x128xf32>, vector<128x128xf32>, vector<1x128xf32> -> vector<1x128xf32>
    %89 = arith.addf %85, %88 : vector<1x128xf32>
    %90 = vector.extract_strided_slice %83 {offsets = [1, 0], sizes = [1, 128], strides = [1, 1]} : vector<4x128xf32> to vector<1x128xf32>
    %91 = vector.extract_strided_slice %84 {offsets = [128, 0], sizes = [128, 128], strides = [1, 1]} : vector<512x128xf32> to vector<128x128xf32>
    %cst_66 = arith.constant dense<0.000000e+00> : vector<1x128xf32>
    %92 = tpu.matmul %90, %91, %cst_66 {dimension_numbers = #tpu.dot_dimension_numbers<[1], [0], [0], [1], [0, 0, 1, 1], [], []>} : vector<1x128xf32>, vector<128x128xf32>, vector<1x128xf32> -> vector<1x128xf32>
    %93 = arith.addf %89, %92 : vector<1x128xf32>
    %94 = vector.extract_strided_slice %83 {offsets = [2, 0], sizes = [1, 128], strides = [1, 1]} : vector<4x128xf32> to vector<1x128xf32>
    %95 = vector.extract_strided_slice %84 {offsets = [256, 0], sizes = [128, 128], strides = [1, 1]} : vector<512x128xf32> to vector<128x128xf32>
    %cst_67 = arith.constant dense<0.000000e+00> : vector<1x128xf32>
    %96 = tpu.matmul %94, %95, %cst_67 {dimension_numbers = #tpu.dot_dimension_numbers<[1], [0], [0], [1], [0, 0, 1, 1], [], []>} : vector<1x128xf32>, vector<128x128xf32>, vector<1x128xf32> -> vector<1x128xf32>
    %97 = arith.addf %93, %96 : vector<1x128xf32>
    %98 = vector.extract_strided_slice %83 {offsets = [3, 0], sizes = [1, 128], strides = [1, 1]} : vector<4x128xf32> to vector<1x128xf32>
    %99 = vector.extract_strided_slice %84 {offsets = [384, 0], sizes = [128, 128], strides = [1, 1]} : vector<512x128xf32> to vector<128x128xf32>
    %cst_68 = arith.constant dense<0.000000e+00> : vector<1x128xf32>
    %100 = tpu.matmul %98, %99, %cst_68 {dimension_numbers = #tpu.dot_dimension_numbers<[1], [0], [0], [1], [0, 0, 1, 1], [], []>} : vector<1x128xf32>, vector<128x128xf32>, vector<1x128xf32> -> vector<1x128xf32>
    %101 = arith.addf %97, %100 : vector<1x128xf32>
    %cst_69 = arith.constant 0.000000e+00 : f32
    %102 = vector.broadcast %cst_69 : f32 to vector<1x128xf32>
    %103 = arith.maximumf %101, %102 : vector<1x128xf32>
    %c0_70 = arith.constant 0 : index
    %c0_71 = arith.constant 0 : index
    %104 = vector.load %arg10[%c0_70, %c0_71] : memref<128x128xf32, #tpu.memory_space<vmem>>, vector<128x128xf32>
    %cst_72 = arith.constant dense<0.000000e+00> : vector<1x128xf32>
    %105 = tpu.matmul %103, %104, %cst_72 {dimension_numbers = #tpu.dot_dimension_numbers<[1], [0], [0], [1], [0, 0, 1, 1], [], []>} : vector<1x128xf32>, vector<128x128xf32>, vector<1x128xf32> -> vector<1x128xf32>
    %c0_73 = arith.constant 0 : index
    %c0_74 = arith.constant 0 : index
    %106 = vector.load %arg11[%c0_73, %c0_74] : memref<1x128xf32, #tpu.memory_space<vmem>>, vector<1x128xf32>
    %107 = arith.addf %105, %106 : vector<1x128xf32>
    %cst_75 = arith.constant 0.000000e+00 : f32
    %108 = vector.broadcast %cst_75 : f32 to vector<1x128xf32>
    %109 = arith.maximumf %107, %108 : vector<1x128xf32>
    %c0_76 = arith.constant 0 : index
    %c0_77 = arith.constant 0 : index
    %110 = vector.load %arg12[%c0_76, %c0_77] : memref<128x128xf32, #tpu.memory_space<vmem>>, vector<128x128xf32>
    %cst_78 = arith.constant dense<0.000000e+00> : vector<1x128xf32>
    %111 = tpu.matmul %109, %110, %cst_78 {dimension_numbers = #tpu.dot_dimension_numbers<[1], [0], [0], [1], [0, 0, 1, 1], [], []>} : vector<1x128xf32>, vector<128x128xf32>, vector<1x128xf32> -> vector<1x128xf32>
    %c0_79 = arith.constant 0 : index
    %c0_80 = arith.constant 0 : index
    %112 = vector.load %arg13[%c0_79, %c0_80] : memref<1x128xf32, #tpu.memory_space<vmem>>, vector<1x128xf32>
    %113 = arith.addf %111, %112 : vector<1x128xf32>
    %c0_81 = arith.constant 0 : index
    %c0_82 = arith.constant 0 : index
    %c0_83 = arith.constant 0 : index
    %114 = vector.load %arg14[%c0_81, %c0_82, %c0_83] : memref<1x1x128xf32, #tpu.memory_space<vmem>>, vector<1x1x128xf32>
    %115 = vector.shape_cast %114 : vector<1x1x128xf32> to vector<1x128xf32>
    %116 = vector.shape_cast %113 : vector<1x128xf32> to vector<1x1x128xf32>
    tpu.vector_store %arg14[%c0_81, %c0_82, %c0_83], %116 {strides = array<i32>} : memref<1x1x128xf32, #tpu.memory_space<vmem>>, vector<1x1x128xf32>,
    return
  }
  func.func @transform_0(%arg0: i32) -> (i32, i32, i32) {
    %c0_i32 = arith.constant 0 : i32
    %c0_i32_0 = arith.constant 0 : i32
    %c0_i32_1 = arith.constant 0 : i32
    return %arg0, %c0_i32, %c0_i32_0 : i32, i32, i32
  }
  func.func @transform_1(%arg0: i32) -> (i32, i32, i32) {
    %c0_i32 = arith.constant 0 : i32
    %c0_i32_0 = arith.constant 0 : i32
    %c0_i32_1 = arith.constant 0 : i32
    %c0_i32_2 = arith.constant 0 : i32
    return %c0_i32, %c0_i32_0, %c0_i32_1 : i32, i32, i32
  }
  func.func @transform_2(%arg0: i32) -> (i32, i32) {
    %c0_i32 = arith.constant 0 : i32
    %c0_i32_0 = arith.constant 0 : i32
    %c0_i32_1 = arith.constant 0 : i32
    return %c0_i32, %c0_i32_0 : i32, i32
  }
  func.func @transform_3(%arg0: i32) -> (i32, i32, i32) {
    %c0_i32 = arith.constant 0 : i32
    %c0_i32_0 = arith.constant 0 : i32
    %c0_i32_1 = arith.constant 0 : i32
    %c0_i32_2 = arith.constant 0 : i32
    return %c0_i32, %c0_i32_0, %c0_i32_1 : i32, i32, i32
  }
  func.func @transform_4(%arg0: i32) -> (i32, i32, i32) {
    %c0_i32 = arith.constant 0 : i32
    %c0_i32_0 = arith.constant 0 : i32
    %c0_i32_1 = arith.constant 0 : i32
    %c0_i32_2 = arith.constant 0 : i32
    return %c0_i32, %c0_i32_0, %c0_i32_1 : i32, i32, i32
  }
  func.func @transform_5(%arg0: i32) -> (i32, i32) {
    %c0_i32 = arith.constant 0 : i32
    %c0_i32_0 = arith.constant 0 : i32
    %c0_i32_1 = arith.constant 0 : i32
    return %c0_i32, %c0_i32_0 : i32, i32
  }
  func.func @transform_6(%arg0: i32) -> (i32, i32, i32) {
    %c0_i32 = arith.constant 0 : i32
    %c0_i32_0 = arith.constant 0 : i32
    %c0_i32_1 = arith.constant 0 : i32
    %c0_i32_2 = arith.constant 0 : i32
    return %c0_i32, %c0_i32_0, %c0_i32_1 : i32, i32, i32
  }
  func.func @transform_7(%arg0: i32) -> (i32, i32) {
    %c0_i32 = arith.constant 0 : i32
    %c0_i32_0 = arith.constant 0 : i32
    %c0_i32_1 = arith.constant 0 : i32
    return %c0_i32, %c0_i32_0 : i32, i32
  }
  func.func @transform_8(%arg0: i32) -> (i32, i32) {
    %c0_i32 = arith.constant 0 : i32
    %c0_i32_0 = arith.constant 0 : i32
    %c0_i32_1 = arith.constant 0 : i32
    return %c0_i32, %c0_i32_0 : i32, i32
  }
  func.func @transform_9(%arg0: i32) -> (i32, i32) {
    %c0_i32 = arith.constant 0 : i32
    %c0_i32_0 = arith.constant 0 : i32
    %c0_i32_1 = arith.constant 0 : i32
    return %c0_i32, %c0_i32_0 : i32, i32
  }
  func.func @transform_10(%arg0: i32) -> (i32, i32) {
    %c0_i32 = arith.constant 0 : i32
    %c0_i32_0 = arith.constant 0 : i32
    %c0_i32_1 = arith.constant 0 : i32
    return %c0_i32, %c0_i32_0 : i32, i32
  }
  func.func @transform_11(%arg0: i32) -> (i32, i32) {
    %c0_i32 = arith.constant 0 : i32
    %c0_i32_0 = arith.constant 0 : i32
    %c0_i32_1 = arith.constant 0 : i32
    return %c0_i32, %c0_i32_0 : i32, i32
  }
  func.func @transform_12(%arg0: i32) -> (i32, i32) {
    %c0_i32 = arith.constant 0 : i32
    %c0_i32_0 = arith.constant 0 : i32
    %c0_i32_1 = arith.constant 0 : i32
    return %c0_i32, %c0_i32_0 : i32, i32
  }
  func.func @transform_13(%arg0: i32) -> (i32, i32, i32) {
    %c0_i32 = arith.constant 0 : i32
    %c0_i32_0 = arith.constant 0 : i32
    %c0_i32_1 = arith.constant 0 : i32
    return %arg0, %c0_i32, %c0_i32_0 : i32, i32, i32
  }
}

</mosaic_0001>

<bundles_post_ra>
// kernel: lenet_forward.1
= control target key start
LH: loop header
LB: loop body
LE: loop exit
PB: predicated region body
PF: predicated region fallthrough
CT: control target
= control target key end

     0   :  { %s2777_s0 = inlined_call_operand.vmem [shape: f32[2,28,28], index: 0, kind: input, shape index: {}]   ;;  %s2778_s1 = inlined_call_operand.hbm [shape: f32[5,28,256], index: 1, kind: input, shape index: {}]   ;;  %s2779_s2 = inlined_call_operand.vmem [shape: f32[1,256], index: 2, kind: input, shape index: {}]   ;;  %s2780_s3 = inlined_call_operand.vmem [shape: f32[2,12,24], index: 3, kind: input, shape index: {}]   ;;  %s2781_s4 = inlined_call_operand.hbm [shape: f32[5,128,256], index: 4, kind: input, shape index: {}]   ;;  %s2782_s5 = inlined_call_operand.vmem [shape: f32[1,256], index: 5, kind: input, shape index: {}]   ;;  %s2783_s6 = inlined_call_operand.vmem [shape: f32[2,4,8], index: 6, kind: input, shape index: {}]   ;;  %s2784_s7 = inlined_call_operand.hbm [shape: f32[512,128], index: 7, kind: input, shape index: {}]   ;;  %s2785_s8 = inlined_call_operand.vmem [shape: f32[1,128], index: 8, kind: input, shape index: {}]   ;;  %s2786_s9 = inlined_call_operand.vmem [shape: f32[128,128], index: 9, kind: input, shape index: {}]   ;;  %s2787_s10 = inlined_call_operand.hbm [shape: f32[1,128], index: 10, kind: input, shape index: {}]   ;;  %s2788_s11 = inlined_call_operand.vmem [shape: f32[128,128], index: 11, kind: input, shape index: {}]   ;;  %s2789_s12 = inlined_call_operand.hbm [shape: f32[1,128], index: 12, kind: input, shape index: {}]   ;;  %s2790_s13 = inlined_call_operand.hbm [shape: f32[2,1,128], index: 13, kind: output, shape index: {}]  }
   0x1   :  { %2799 = sst [smem:[#allocation23_spill]] %s2781_s4 }
   0x2   :  { %2800 = sst [smem:[#allocation24_spill]] %s2787_s10 }
   0x3   :  { %18 = vsyncpa [#allocation3], 0 }
   0x4   :  { %19 = vsyncpa [#allocation6], 0 }
   0x5   :  { %20 = vsyncpa [#allocation9], 0 }
   0x6   :  { %21 = vsyncpa [#allocation4], 0 }
   0x7   :  { %23 = vsyncpa [#allocation4 + $0x1], 0  ;;  %s2397_s25 = smov 0   ;;  %s2399_s26 = smov 0  }
   0x8   :  { %s2401_s27 = smov 0   ;;  %s2403_s28 = smov 0  }
   0x9 LB: > { %2801 = sst [smem:[#allocation16_spill]] %s2304_s25  ;;  %s2418_s29 = sadd.s32 4294967295, %s2316_s28   ;;  %s2316_s28 = sphi %s2403_s28, %s2818_s28   ;;  %s2312_s27 = sphi %s2401_s27, %s2820_s27   ;;  %s2308_s26 = sphi %s2399_s26, %s2822_s26   ;;  %s2304_s25 = sphi %s2397_s25, %s2821_s25  }
   0xa   : > { %2802 = sst [smem:[#allocation17_spill]] %s2312_s27  ;;  %s1916_s30 = sadd.s32 4294967294, %s2316_s28  }
   0xb   : > { %2803 = sst [smem:[#allocation18_spill]] %s2316_s28  ;;  %s2422_s14 = sadd.s32 1, %s2316_s28  }
   0xc   : > { %2804 = sst [smem:[#allocation19_spill]] %s2422_s14  ;;  %s314_s15 = sadd.s32 1, %s2312_s27 }
   0xd   : > { %s311_s16 = ssub.s32 %s2316_s28, %s2422_s14  ;;  %p324_p0 = scmp.ne.s32.totalorder %s2312_s27, %s2308_s26 }
   0xe   : > { %p312_p1 = scmp.eq.s32.totalorder %s311_s16, 0  ;;  %p325_p2 = scmp.eq.s32.totalorder %s2418_s29, 1 }
   0xf   : > { %p330_p3 = scmp.ne.s32.totalorder %s2308_s26, %s2304_s25  ;;  %p331_p4 = scmp.eq.s32.totalorder %s1916_s30, 1 }
  0x10   : > { %s2433_s17 = scalar_select %p312_p1, %s2312_s27, %s314_s15  }
  0x11   : > { %p2435_p5 = por %p325_p2, %p324_p0  ;;  %p2439_p6 = por %p331_p4, %p330_p3 }
  0x12   : > { %2805 = sst [smem:[#allocation20_spill]] %s2433_s17  ;;  %p1917_p7 = scmp.ge.s32.totalorder %s2316_s28, 1 }
  0x13   : > { %s2806_s18 = scalar_select %p2435_p5, 1, 0 }
  0x14   : > { %s2808_s19 = scalar_select %p2439_p6, 1, 0 }
  0x15   : > { %2807 = sst [smem:[#allocation21_spill]] %s2806_s18  ;;  %p338_p8 = scmp.lt.s32.totalorder %s2316_s28, 3 }
  0x16   : > { %2809 = sst [smem:[#allocation22_spill]] %s2808_s19  ;;  %p2040_p9 = scmp.eq.s32.totalorder %s2418_s29, 0 }
  0x17   : > { %p2446_p10 = pnand %p1917_p7, %p338_p8  ;;  %s2811_s4 = sld [smem:[#allocation23_spill]] }
  0x18   : > { %s2812_s10 = sld [smem:[#allocation24_spill]]  ;;  %s2318_s17 = smov [#allocation5]  }
  0x19   : > { %p2020_p11 = pneg %p2446_p10  ;;  %s371_s27 = sshll.u32 %s2318_s17, 4  ;;  %s372_s27 = int_to_ptr.vmem [resolvable:$true] %s371_s27 }
  0x1a   : > { %s2319_s21 = smov 256   ;;  %s2320_s22 = smov 16  }
  0x1b   : > { %p2460_p12 = pnand %p2040_p9, %p2020_p11  ;;  %s389_s25 = sshll.u32 %s2784_s7, 4  ;;  %s390_s25 = int_to_ptr.hbm [resolvable:$true] %s389_s25 }
  0x1c   : > { %s2322_s28 = smov [#allocation2]   ;;  %s2325_s24 = smov 8  }
  0x1d   : > { %s369_s23 = sshll.u32 %s2811_s4, 4  ;;  %s2321_s4 = smov [#allocation8]   ;;  %s370_s23 = int_to_ptr.hbm [resolvable:$true] %s369_s23 }
  0x1e   : > { %s410_s15 = sshll.u32 %s2812_s10, 4  ;;  %s412_s14 = sshll.u32 %s2321_s4, 4  ;;  %s411_s15 = int_to_ptr.hbm [resolvable:$true] %s410_s15  ;;  %s413_s14 = int_to_ptr.vmem [resolvable:$true] %s412_s14 }
  0x1f   : > { %2026 = dma.hbm_to_vmem [thread:$0]  (!%p2460_p12), %s370_s23, 20480, %s372_s27, [#allocation6], %s2319_s21, %s2319_s21, %s2320_s22  }
  0x20   : > { %s349_s10 = sshll.u32 %s2778_s1, 4  ;;  %s351_s18 = sshll.u32 %s2322_s28, 4  ;;  %s350_s10 = int_to_ptr.hbm [resolvable:$true] %s349_s10  ;;  %s352_s18 = int_to_ptr.vmem [resolvable:$true] %s351_s18 }
  0x21   : > { %2032 = dma.hbm_to_vmem [thread:$0]  (!%p2460_p12), %s411_s15, 16, %s413_s14, [#allocation9]  }
  0x22   : > { %2023 = dma.hbm_to_vmem [thread:$0]  (!%p2460_p12), %s350_s10, 5120, %s352_s18, [#allocation3], %s2319_s21, %s2319_s21, %s2320_s22  }
  0x23   : > { %s2323_s4 = smov [#allocation7]   ;;  %s2324_s23 = smov 128  }
  0x24   : > { %s391_s27 = sshll.u32 %s2323_s4, 4  ;;  %s425_s15 = sshll.u32 %s2789_s12, 4  ;;  %s392_s27 = int_to_ptr.vmem [resolvable:$true] %s391_s27  ;;  %s426_s15 = int_to_ptr.hbm [resolvable:$true] %s425_s15 }
  0x25   : > { %2029 = dma.hbm_to_vmem [thread:$0]  (!%p2460_p12), %s390_s25, 8192, %s392_s27, [#allocation6], %s2324_s23, %s2324_s23, %s2325_s24  }
  0x26   : > { %s2326_s19 = smov [#allocation10]   ;;  %448 = sbr.rel (%p2446_p10) target bundleno = 1133 (0x46d), region = 72 }
  0x27   : > { %s427_s17 = sshll.u32 %s2326_s19, 4  ;;  %s428_s17 = int_to_ptr.vmem [resolvable:$true] %s427_s17 }
  0x28   : > { %2035 = dma.hbm_to_vmem [thread:$0]  (!%p2460_p12), %s426_s15, 16, %s428_s17, [#allocation9]  }
  0x2b   : > { %2287 = dma.done.wait (%p2040_p9), [#allocation3], 5120  }
  0x2c   : > { %2289 = vsyncadd (%p2040_p9), [#allocation3], 4294962176 }
  0x2d   : > { %2291 = dma.done.wait (%p2040_p9), [#allocation6], 28672  }
  0x2e   : > { %2293 = vsyncadd (%p2040_p9), [#allocation6], 4294938624 }
  0x2f   : > { %2295 = dma.done.wait (%p2040_p9), [#allocation9], 32  }
  0x30   : > { %2297 = vsyncadd (%p2040_p9), [#allocation9], 4294967264  ;;  %p512_p13 = scmp.lt.s32.totalorder %s2418_s29, 1  ;;  %vm557_vm0 = vcmask 1043456   ;;  %v536_v0 = vld [vmem:[#allocation2 + $0x70] sm:$0xf]  ;;  %s1807_s21 = scalar_lea.hbm %s2790_s13, %s2418_s29 }
  0x31   : > { %v537_v1 = vld [vmem:[#allocation2 + $0x78] sm:$0xf]  ;;  %v534_v2 = vld [vmem:[#allocation2 + $0x60] sm:$0xff]  ;;  %1990 = vmatpush.msk.msra.mxu2 %vm557_vm0, %v536_v0  ;;  %v535_v3 = vld [vmem:[#allocation2 + $0x68] sm:$0xff]  ;;  %1932 = vmatpush.msk.msra.mxu0 %vm557_vm0, %v536_v0  ;;  %vm542_vm1 = vcmask 1046528   ;;  %vm550_vm2 = vcmask 228352  }
  0x32   : > { %s513_s10 = scalar_select %p512_p13, %s2418_s29, 1  ;;  %1994 = vmatpush.msk.msra.mxu3 %vm557_vm0, %v537_v1  ;;  %v532_v4 = vld [vmem:[#allocation2 + $0x50] sm:$0xff]  ;;  %v533_v5 = vld [vmem:[#allocation2 + $0x58] sm:$0xff]  ;;  %1936 = vmatpush.msk.msra.mxu1 %vm557_vm0, %v537_v1  ;;  %v530_v9 = vld [vmem:[#allocation2 + $0x40] sm:$0xff]  ;;  %vm689_vm3 = vcmask 1045504   ;;  %vm776_vm4 = vcmask 1044480  }
  0x33   : > { %1991 = vmatpush.msra.mxu2 %v534_v2  ;;  %v531_v10 = vld [vmem:[#allocation2 + $0x48] sm:$0xff]  ;;  %577 = vmatpush.msra.mxu0 %v534_v2  ;;  %v527_v14 = vld [vmem:[#allocation2 + $0x30] sm:$0xf]  ;;  %v528_v15 = vld [vmem:[#allocation2 + $0x38] sm:$0xf]  ;;  %vm960_vm5 = vcmask 195584  }
  0x34   : > { %s1989_s25 = sshll.u32 %s513_s10, 5  ;;  %1995 = vmatpush.msra.mxu3 %v535_v3  ;;  %603 = vmatpush.msra.mxu1 %v535_v3  ;;  %v525_v18 = vld [vmem:[#allocation2 + $0x20] sm:$0xff]  ;;  %v526_v19 = vld [vmem:[#allocation2 + $0x28] sm:$0xff]  ;;  %v523_v22 = vld [vmem:[#allocation2 + $0x10] sm:$0xff]  ;;  %vm1473_vm6 = vcmask 64512   ;;  %s510_s28 = sand.u32 1, %s2308_s26  }
  0x35   : > { %s2502_s20 = scalar_lea.vmem %s2777_s0, %s1989_s25  ;;  %1992 = vmatpush.msra.mxu2 %v532_v4  ;;  %578 = vmatpush.msra.mxu0 %v532_v4  ;;  %v524_v23 = vld [vmem:[#allocation2 + $0x18] sm:$0xff]  ;;  %v687_v24 = vld [vmem:[#allocation2 + $0xb0] sm:$0xf]  ;;  %v521_v26 = vld [vmem:[#allocation2] sm:$0xff]  ;;  %s511_s22 = scalar_lea.vmem [#allocation11], %s510_s28 }
  0x36   : > { %v2507_v6 = vld [vmem:[%s2502_s20 + $0x8] sm:$0xff]  ;;  %v2512_v7 = vld [vmem:[%s2502_s20 + $0x10] sm:$0xff]  ;;  %1996 = vmatpush.msra.mxu3 %v533_v5  ;;  %v2517_v12 = vld [vmem:[%s2502_s20 + $0x18] sm:$0xf]  ;;  %604 = vmatpush.msra.mxu1 %v533_v5  ;;  %s1809_s4 = sshll.u32 %s511_s22, 4  ;;  %s1811_s27 = sshll.u32 %s1807_s21, 4  ;;  %s1810_s4 = int_to_ptr.vmem [resolvable:$true] %s1809_s4  ;;  %s1812_s27 = int_to_ptr.hbm [resolvable:$true] %s1811_s27 }
  0x37   : > { %v544_v8 = vrot.slane %v2507_v6, 1  ;;  %v546_v11 = vrot.slane %v2512_v7, 1  ;;  %v2521_v16 = vld [vmem:[%s2502_s20] sm:$0xff]  ;;  %1993 = vmatpush.msra.mxu2 %v530_v9  ;;  %v548_v20 = vrot.slane %v2517_v12, 1  ;;  %579 = vmatpush.msra.mxu0 %v530_v9  ;;  %v688_v25 = vld [vmem:[#allocation2 + $0xb8] sm:$0xf] }
  0x38   : > { %1997 = vmatpush.msra.mxu3 %v531_v10  ;;  %v543_v17 = vrot.slane %v2521_v16, 1  ;;  %605 = vmatpush.msra.mxu1 %v531_v10  ;;  %v522_v27 = vld [vmem:[#allocation2 + $0x8] sm:$0xff]  ;;  %v685_v29 = vld [vmem:[#allocation2 + $0xa0] sm:$0xff]  ;;  %v690_v31 = vrot.slane %v2521_v16, 2  ;;  %v691_v32 = vrot.slane %v2507_v6, 2  ;;  %v683_v35 = vld [vmem:[#allocation2 + $0x90] sm:$0xff] }
  0x39   : > { %v547_v13 = vsel %vm542_vm1, %v544_v8, %v546_v11  ;;  %1940 = vmatpush.msk.msrb.mxu2 %vm557_vm0, %v527_v14  ;;  %v549_v28 = vsel %vm542_vm1, %v546_v11, %v548_v20  ;;  %1948 = vmatpush.msk.msrb.mxu0 %vm557_vm0, %v687_v24  ;;  %v686_v30 = vld [vmem:[#allocation2 + $0xa8] sm:$0xff]  ;;  %v774_v33 = vld [vmem:[#allocation2 + $0xf0] sm:$0xf]  ;;  %v775_v34 = vld [vmem:[#allocation2 + $0xf8] sm:$0xf]  ;;  %v693_v46 = vrot.slane %v2512_v7, 2 }
  0x3a   : > { %1934 = vmatmul.msk.f32.vlgmr.msra.gmra.mxu2 %vm550_vm2, %v547_v13  ;;  %1938 = vmatmul.msk.f32.vlgmr.msra.gmra.mxu3 %vm550_vm2, %v547_v13  ;;  %v545_v21 = vsel %vm542_vm1, %v543_v17, %v544_v8  ;;  %v684_v36 = vld [vmem:[#allocation2 + $0x98] sm:$0xff]  ;;  %v772_v37 = vld [vmem:[#allocation2 + $0xe0] sm:$0xff]  ;;  %v773_v38 = vld [vmem:[#allocation2 + $0xe8] sm:$0xff]  ;;  %v692_v41 = vsel %vm689_vm3, %v690_v31, %v691_v32  ;;  %v695_v56 = vrot.slane %v2517_v12, 2  ;;  %v863_v58 = vrot.slane %v2521_v16, 4  ;;  %s1799_s23 = scalar_lea.sflag [#allocation4], %s510_s28 }
  0x3b   : > { %1944 = vmatpush.msk.msrb.mxu3 %vm557_vm0, %v528_v15  ;;  %641 = vmatpush.msrb.mxu2 %v525_v18  ;;  %v681_v39 = vld [vmem:[#allocation2 + $0x80] sm:$0xff]  ;;  %v682_v40 = vld [vmem:[#allocation2 + $0x88] sm:$0xff]  ;;  %v770_v42 = vld [vmem:[#allocation2 + $0xd0] sm:$0xff]  ;;  %v694_v51 = vsel %vm689_vm3, %v691_v32, %v693_v46  ;;  %v864_v59 = vrot.slane %v2507_v6, 4  ;;  %v777_v60 = vrot.slane %v2521_v16, 3  ;;  %v778_v61 = vrot.slane %v2507_v6, 3 }
  0x3c   : > { %1933 = vmatmul.msk.f32.vlgmr.msra.gmra.mxu0 %vm550_vm2, %v545_v21  ;;  %1937 = vmatmul.msk.f32.vlgmr.msra.gmra.mxu1 %vm550_vm2, %v545_v21  ;;  %v771_v43 = vld [vmem:[#allocation2 + $0xd8] sm:$0xff]  ;;  %v768_v44 = vld [vmem:[#allocation2 + $0xc0] sm:$0xff]  ;;  %v769_v45 = vld [vmem:[#allocation2 + $0xc8] sm:$0xff]  ;;  %v696_v57 = vsel %vm689_vm3, %v693_v46, %v695_v56  ;;  %v866_v0 = vrot.slane %v2512_v7, 4  ;;  %v780_v1 = vrot.slane %v2512_v7, 3  ;;  %v868_v4 = vrot.slane %v2517_v12, 4 }
  0x3d   : > { %667 = vmatpush.msrb.mxu3 %v526_v19  ;;  %642 = vmatpush.msrb.mxu2 %v523_v22  ;;  %v861_v47 = vld [vmem:[#allocation2 + $0x130] sm:$0xf]  ;;  %v862_v48 = vld [vmem:[#allocation2 + $0x138] sm:$0xf]  ;;  %v859_v49 = vld [vmem:[#allocation2 + $0x120] sm:$0xff]  ;;  %v865_v62 = vsel %vm557_vm0, %v863_v58, %v864_v59  ;;  %v779_v63 = vsel %vm776_vm4, %v777_v60, %v778_v61  ;;  %v782_v5 = vrot.slane %v2517_v12, 3 }
  0x3e   : > { %1952 = vmatpush.msk.msrb.mxu1 %vm557_vm0, %v688_v25  ;;  %722 = vmatpush.msrb.mxu0 %v685_v29  ;;  %v860_v50 = vld [vmem:[#allocation2 + $0x128] sm:$0xff]  ;;  %v857_v52 = vld [vmem:[#allocation2 + $0x110] sm:$0xff]  ;;  %v858_v53 = vld [vmem:[#allocation2 + $0x118] sm:$0xff]  ;;  %v867_v2 = vsel %vm557_vm0, %v864_v59, %v866_v0  ;;  %v781_v3 = vsel %vm776_vm4, %v778_v61, %v780_v1  ;;  %s2256_s24 = sshra.s32 %s1812_s27, 4  ;;  %s2262_s29 = scalar_lea.hbm %s2790_s13, 2  ;;  %s2257_s24 = int_to_ptr.hbm [resolvable:$true] %s2256_s24 }
  0x3f   : > { %668 = vmatpush.msrb.mxu3 %v524_v23  ;;  %643 = vmatpush.msrb.mxu2 %v521_v26  ;;  %v855_v54 = vld [vmem:[#allocation2 + $0x100] sm:$0xff]  ;;  %v856_v55 = vld [vmem:[#allocation2 + $0x108] sm:$0xff]  ;;  %s2258_s30 = scalar_lea.hbm %s2257_s24, 1  ;;  %p2263_p3 = scmp.lt.s32.totalorder %s2257_s24, %s2790_s13 }
  0x40   : > { %748 = vmatpush.msrb.mxu1 %v686_v30  ;;  %723 = vmatpush.msrb.mxu0 %v683_v35  ;;  %p2259_p0 = scmp.ne.s32.totalorder %s2257_s24, %s2258_s30  ;;  %p2264_p4 = scmp.lt.s32.totalorder %s2262_s29, %s2258_s30 }
  0x41   : > { %669 = vmatpush.msrb.mxu3 %v522_v27  ;;  %1956 = vmatpush.msk.msra.mxu2 %vm557_vm0, %v774_v33 }
  0x42   : > { %1935 = vmatmul.msk.f32.gmra.mxu2 %vm550_vm2, %v549_v28  ;;  %1939 = vmatmul.msk.f32.gmra.mxu3 %vm550_vm2, %v549_v28  ;;  %p2260_p1 = pnand %p2259_p0, %p2435_p5  ;;  %p2265_p7 = por %p2264_p4, %p2263_p3 }
  0x43   : > { %1960 = vmatpush.msk.msra.mxu3 %vm557_vm0, %v775_v34  ;;  %749 = vmatpush.msrb.mxu1 %v684_v36 }
  0x44   : > { %809 = vmatpush.msra.mxu2 %v772_v37  ;;  %724 = vmatpush.msrb.mxu0 %v681_v39  ;;  %p2261_p2 = pneg %p2260_p1 }
  0x45   : > { %835 = vmatpush.msra.mxu3 %v773_v38  ;;  %750 = vmatpush.msrb.mxu1 %v682_v40 }
  0x46   : > { %1949 = vmatmul.msk.f32.vlgmr.msrb.gmra.mxu0 %vm550_vm2, %v692_v41  ;;  %1953 = vmatmul.msk.f32.vlgmr.msrb.gmra.mxu1 %vm550_vm2, %v692_v41  ;;  %p2266_p8 = pnand %p2265_p7, %p2261_p2 }
  0x47   : > { %810 = vmatpush.msra.mxu2 %v770_v42  ;;  %836 = vmatpush.msra.mxu3 %v771_v43 }
  0x48   : > { %1964 = vmatpush.msk.msra.mxu0 %vm557_vm0, %v861_v47  ;;  %1968 = vmatpush.msk.msra.mxu1 %vm557_vm0, %v862_v48 }
  0x49   : > { %811 = vmatpush.msra.mxu2 %v768_v44  ;;  %837 = vmatpush.msra.mxu3 %v769_v45 }
  0x4a   : > { %1941 = vmatmul.msk.f32.vlgmr.msrb.gmra.mxu2 %vm550_vm2, %v2521_v16  ;;  %1945 = vmatmul.msk.f32.vlgmr.msrb.gmra.mxu3 %vm550_vm2, %v2521_v16 }
  0x4b   : > { %895 = vmatpush.msra.mxu0 %v859_v49  ;;  %921 = vmatpush.msra.mxu1 %v860_v50  ;;  %v940_v50 = vld [vmem:[%s2779_s2] sm:$0x3] }
  0x4c   : > { %v942_v59 = vperm.slane %v940_v50, 0  ;;  %v943_v60 = vperm.slane %v940_v50, 1  ;;  %v1117_v50 = vld [vmem:[#allocation5 + $0x150] sm:$0xff] }
  0x4d   : > { %896 = vmatpush.msra.mxu0 %v857_v52  ;;  %922 = vmatpush.msra.mxu1 %v858_v53 }
  0x4e   : > { %1950 = vmatmul.msk.f32.gmra.mxu0 %vm550_vm2, %v694_v51  ;;  %1954 = vmatmul.msk.f32.gmra.mxu1 %vm550_vm2, %v694_v51 }
  0x4f   : > { %897 = vmatpush.msra.mxu0 %v855_v54  ;;  %923 = vmatpush.msra.mxu1 %v856_v55 }
  0x52   : > { %1942 = vmatmul.msk.f32.gmra.mxu2 %vm550_vm2, %v2507_v6  ;;  %1946 = vmatmul.msk.f32.gmra.mxu3 %vm550_vm2, %v2507_v6  ;;  %v869_v6 = vsel %vm557_vm0, %v866_v0, %v868_v4 }
  0x56   : > { %1951 = vmatmul.msk.f32.gmra.mxu0 %vm550_vm2, %v696_v57  ;;  %1955 = vmatmul.msk.f32.gmra.mxu1 %vm550_vm2, %v696_v57 }
  0x5a   : > { %1943 = vmatmul.msk.f32.gmra.mxu2 %vm550_vm2, %v2512_v7  ;;  %1947 = vmatmul.msk.f32.gmra.mxu3 %vm550_vm2, %v2512_v7  ;;  %v783_v7 = vsel %vm776_vm4, %v780_v1, %v782_v5  ;;  %v1137_v5 = vld [vmem:[#allocation5 + $0x1f0] sm:$0xff] }
  0x5b   : > { %1145 = vmatpush.msrb.mxu0 %v1137_v5  ;;  %v1109_v5 = vld [vmem:[#allocation5 + $0x110] sm:$0xff] }
  0x5e   : > { %1965 = vmatmul.msk.f32.vlgmr.msra.gmra.mxu0 %vm550_vm2, %v865_v62  ;;  %1969 = vmatmul.msk.f32.vlgmr.msra.gmra.mxu1 %vm550_vm2, %v865_v62 }
  0x62   : > { %1957 = vmatmul.msk.f32.vlgmr.msra.gmra.mxu2 %vm550_vm2, %v779_v63  ;;  %1961 = vmatmul.msk.f32.vlgmr.msra.gmra.mxu3 %vm550_vm2, %v779_v63 }
  0x66   : > { %1966 = vmatmul.msk.f32.gmra.mxu0 %vm550_vm2, %v867_v2  ;;  %1970 = vmatmul.msk.f32.gmra.mxu1 %vm550_vm2, %v867_v2 }
  0x6a   : > { %1958 = vmatmul.msk.f32.gmra.mxu2 %vm550_vm2, %v781_v3  ;;  %1962 = vmatmul.msk.f32.gmra.mxu3 %vm550_vm2, %v781_v3 }
  0x6e   : > { %1967 = vmatmul.msk.f32.gmra.mxu0 %vm550_vm2, %v869_v6  ;;  %1971 = vmatmul.msk.f32.gmra.mxu1 %vm550_vm2, %v869_v6  ;;  %v1138_v6 = vld [vmem:[#allocation5 + $0x1f8] sm:$0xff] }
  0x6f   : > { %1165 = vmatpush.msrb.mxu1 %v1138_v6  ;;  %v1110_v6 = vld [vmem:[#allocation5 + $0x118] sm:$0xff] }
  0x72   : > { %1959 = vmatmul.msk.f32.gmra.mxu2 %vm550_vm2, %v783_v7  ;;  %1963 = vmatmul.msk.f32.gmra.mxu3 %vm550_vm2, %v783_v7 }
  0xb9   : > { %v581_v8 = vpop.f32.mrf.mxu0  ;;  %v607_v9 = vpop.f32.mrf.mxu1 }
  0xbd   : > { %v584_v10 = vpop.f32.mrf.mxu2  ;;  %v610_v11 = vpop.f32.mrf.mxu3 }
  0xc3   : > { %v726_v15 = vpop.f32.mrf.mxu0  ;;  %v752_v12 = vpop.f32.mrf.mxu1 }
  0xc5   : > { %v587_v13 = vpop.f32.mrf.mxu2  ;;  %v613_v14 = vpop.f32.mrf.mxu3 }
  0xcb   : > { %v729_v18 = vpop.f32.mrf.mxu0  ;;  %v755_v19 = vpop.f32.mrf.mxu1 }
  0xcd   : > { %v645_v16 = vpop.f32.mrf.mxu2  ;;  %v671_v17 = vpop.f32.mrf.mxu3 }
  0xce   : > { %v646_v36 = vadd.f32 %v645_v16, %v581_v8  ;;  %v672_v37 = vadd.f32 %v671_v17, %v607_v9  ;;  %v1134_v16 = vld [vmem:[#allocation5 + $0x1d8] sm:$0xff] }
  0xd0   : > { %v761_v42 = vadd.f32 %v726_v15, %v646_v36  ;;  %v762_v43 = vadd.f32 %v752_v12, %v672_v37  ;;  %v1133_v12 = vld [vmem:[#allocation5 + $0x1d0] sm:$0xff]  ;;  %v1124_v36 = vld [vmem:[#allocation5 + $0x188] sm:$0xff]  ;;  %v1098_v37 = vld [vmem:[#allocation5 + $0xc0] sm:$0xff] }
  0xd3   : > { %v732_v22 = vpop.f32.mrf.mxu0  ;;  %v758_v23 = vpop.f32.mrf.mxu1 }
  0xd5   : > { %v648_v20 = vpop.f32.mrf.mxu2  ;;  %v674_v21 = vpop.f32.mrf.mxu3 }
  0xd6   : > { %v649_v32 = vadd.f32 %v648_v20, %v584_v10  ;;  %v675_v33 = vadd.f32 %v674_v21, %v610_v11  ;;  %v1135_v11 = vld [vmem:[#allocation5 + $0x1e0] sm:$0xff]  ;;  %v1132_v21 = vld [vmem:[#allocation5 + $0x1c8] sm:$0xff] }
  0xd7   : > { %1146 = vmatpush.msrb.mxu0 %v1135_v11  ;;  %v1131_v20 = vld [vmem:[#allocation5 + $0x1c0] sm:$0xff]  ;;  %v1076_v11 = vld [vmem:[#allocation5 + $0x10] sm:$0xff] }
  0xd8   : > { %v763_v38 = vadd.f32 %v729_v18, %v649_v32  ;;  %v764_v39 = vadd.f32 %v755_v19, %v675_v33  ;;  %v958_v19 = vld [vmem:[%s2780_s3] sm:$0xff]  ;;  %v1126_v32 = vld [vmem:[#allocation5 + $0x198] sm:$0xff]  ;;  %v1100_v33 = vld [vmem:[#allocation5 + $0xd0] sm:$0xff] }
  0xd9   : > { %1147 = vmatpush.msrb.mxu0 %v1133_v12  ;;  %v1074_v12 = vld [vmem:[#allocation5] sm:$0xff] }
  0xdb   : > { %v899_v26 = vpop.f32.mrf.mxu0  ;;  %v925_v27 = vpop.f32.mrf.mxu1  ;;  %1148 = vmatpush.msrb.mxu0 %v1131_v20  ;;  %v1336_v20 = vld [vmem:[#allocation5 + $0x3f8] sm:$0xff] }
  0xdd   : > { %v651_v24 = vpop.f32.mrf.mxu2  ;;  %v677_v25 = vpop.f32.mrf.mxu3 }
  0xde   : > { %v652_v40 = vadd.f32 %v651_v24, %v587_v13  ;;  %v678_v41 = vadd.f32 %v677_v25, %v613_v14  ;;  %v1136_v13 = vld [vmem:[#allocation5 + $0x1e8] sm:$0xff]  ;;  %v1104_v24 = vld [vmem:[#allocation5 + $0xf0] sm:$0xff]  ;;  %v1105_v25 = vld [vmem:[#allocation5 + $0xf8] sm:$0xff] }
  0xdf   : > { %1166 = vmatpush.msrb.mxu1 %v1136_v13  ;;  %v1077_v13 = vld [vmem:[#allocation5 + $0x18] sm:$0xff] }
  0xe0   : > { %v765_v46 = vadd.f32 %v732_v22, %v652_v40  ;;  %v766_v47 = vadd.f32 %v758_v23, %v678_v41  ;;  %v1129_v22 = vld [vmem:[#allocation5 + $0x1b0] sm:$0xff]  ;;  %v1130_v23 = vld [vmem:[#allocation5 + $0x1b8] sm:$0xff] }
  0xe1   : > { %1167 = vmatpush.msrb.mxu1 %v1134_v16  ;;  %1149 = vmatpush.msrb.mxu0 %v1129_v22  ;;  %v1122_v40 = vld [vmem:[#allocation5 + $0x178] sm:$0xff]  ;;  %v1096_v41 = vld [vmem:[#allocation5 + $0xb0] sm:$0xff]  ;;  %v1075_v16 = vld [vmem:[#allocation5 + $0x8] sm:$0xff] }
  0xe2   : > { %v1255_v22 = vld [vmem:[#allocation5 + $0x2e8] sm:$0xff] }
  0xe3   : > { %v902_v30 = vpop.f32.mrf.mxu0  ;;  %v928_v31 = vpop.f32.mrf.mxu1  ;;  %1168 = vmatpush.msrb.mxu1 %v1132_v21  ;;  %v1254_v21 = vld [vmem:[#allocation5 + $0x2e0] sm:$0xff] }
  0xe5   : > { %v813_v28 = vpop.f32.mrf.mxu2  ;;  %v839_v29 = vpop.f32.mrf.mxu3  ;;  %1169 = vmatpush.msrb.mxu1 %v1130_v23  ;;  %v1333_v23 = vld [vmem:[#allocation5 + $0x3e0] sm:$0xff] }
  0xe6   : > { %v848_v48 = vadd.f32 %v813_v28, %v761_v42  ;;  %v849_v49 = vadd.f32 %v839_v29, %v762_v43  ;;  %v959_v28 = vld [vmem:[%s2780_s3 + $0x8] sm:$0xf]  ;;  %v1102_v29 = vld [vmem:[#allocation5 + $0xe0] sm:$0xff]  ;;  %v1097_v42 = vld [vmem:[#allocation5 + $0xb8] sm:$0xff] }
  0xe7   : > { %v1976_v43 = vld [vmem:[%s2780_s3 + $0x10] sm:$0xff] }
  0xe8   : > { %v934_v61 = vadd.f32 %v899_v26, %v848_v48  ;;  %v935_v62 = vadd.f32 %v925_v27, %v849_v49  ;;  %v1127_v26 = vld [vmem:[#allocation5 + $0x1a0] sm:$0xff]  ;;  %v1128_v27 = vld [vmem:[#allocation5 + $0x1a8] sm:$0xff]  ;;  %v1092_v48 = vld [vmem:[#allocation5 + $0x90] sm:$0xff] }
  0xe9   : > { %1150 = vmatpush.msrb.mxu0 %v1127_v26  ;;  %1170 = vmatpush.msrb.mxu1 %v1128_v27  ;;  %v1093_v49 = vld [vmem:[#allocation5 + $0x98] sm:$0xff]  ;;  %v1331_v27 = vld [vmem:[#allocation5 + $0x3d0] sm:$0xff] }
  0xea   : > { %v946_v7 = vadd.f32 %v942_v59, %v934_v61  ;;  %v947_v8 = vadd.f32 %v943_v60, %v935_v62  ;;  %v1113_v61 = vld [vmem:[#allocation5 + $0x130] sm:$0xff]  ;;  %v1114_v62 = vld [vmem:[#allocation5 + $0x138] sm:$0xff] }
  0xeb   : > { %v905_v51 = vpop.f32.mrf.mxu0  ;;  %v931_v52 = vpop.f32.mrf.mxu1  ;;  %1171 = vmatpush.msrb.mxu1 %v1126_v32  ;;  %v1253_v26 = vld [vmem:[#allocation5 + $0x2d8] sm:$0xff]  ;;  %v1330_v32 = vld [vmem:[#allocation5 + $0x3c8] sm:$0xff] }
  0xec   : > { %v952_v17 = vmax.f32 %v946_v7, 0.0  ;;  %v953_v18 = vmax.f32 %v947_v8, 0.0  ;;  %v1080_v7 = vld [vmem:[#allocation5 + $0x30] sm:$0xff]  ;;  %v1081_v8 = vld [vmem:[#allocation5 + $0x38] sm:$0xff] }
  0xed   : > { %v816_v34 = vpop.f32.mrf.mxu2  ;;  %v842_v35 = vpop.f32.mrf.mxu3  ;;  %1172 = vmatpush.msrb.mxu1 %v1124_v36  ;;  %v1328_v36 = vld [vmem:[#allocation5 + $0x3b8] sm:$0xff] }
  0xee   : > { %v850_v44 = vadd.f32 %v816_v34, %v763_v38  ;;  %v851_v45 = vadd.f32 %v842_v35, %v764_v39  ;;  %v1101_v34 = vld [vmem:[#allocation5 + $0xd8] sm:$0xff]  ;;  %v1123_v35 = vld [vmem:[#allocation5 + $0x180] sm:$0xff]  ;;  %v1099_v38 = vld [vmem:[#allocation5 + $0xc8] sm:$0xff] }
  0xef   : > { %v1121_v39 = vld [vmem:[#allocation5 + $0x170] sm:$0xff]  ;;  %1173 = vmatpush.msrb.mxu1 %v1122_v40  ;;  %v1326_v40 = vld [vmem:[#allocation5 + $0x3a8] sm:$0xff] }
  0xf0   : > { %v936_v55 = vadd.f32 %v902_v30, %v850_v44  ;;  %v937_v56 = vadd.f32 %v928_v31, %v851_v45  ;;  %v1103_v30 = vld [vmem:[#allocation5 + $0xe8] sm:$0xff]  ;;  %v1125_v31 = vld [vmem:[#allocation5 + $0x190] sm:$0xff]  ;;  %v1094_v44 = vld [vmem:[#allocation5 + $0xa0] sm:$0xff] }
  0xf1   : > { %1151 = vmatpush.msrb.mxu0 %v1125_v31  ;;  %v1095_v45 = vld [vmem:[#allocation5 + $0xa8] sm:$0xff]  ;;  %v1329_v31 = vld [vmem:[#allocation5 + $0x3c0] sm:$0xff] }
  0xf2   : > { %v948_v1 = vadd.f32 %v942_v59, %v936_v55  ;;  %v949_v2 = vadd.f32 %v943_v60, %v937_v56  ;;  %v1116_v55 = vld [vmem:[#allocation5 + $0x148] sm:$0xff]  ;;  %v1088_v56 = vld [vmem:[#allocation5 + $0x70] sm:$0xff] }
  0xf3   : > { %1152 = vmatpush.msrb.mxu0 %v1123_v35  ;;  %v1327_v35 = vld [vmem:[#allocation5 + $0x3b0] sm:$0xff] }
  0xf4   : > { %v954_v14 = vmax.f32 %v948_v1, 0.0  ;;  %v955_v15 = vmax.f32 %v949_v2, 0.0  ;;  %v1111_v1 = vld [vmem:[#allocation5 + $0x120] sm:$0xff]  ;;  %v1112_v2 = vld [vmem:[#allocation5 + $0x128] sm:$0xff] }
  0xf5   : > { %v819_v53 = vpop.f32.mrf.mxu2  ;;  %v845_v54 = vpop.f32.mrf.mxu3  ;;  %1153 = vmatpush.msrb.mxu0 %v1121_v39  ;;  %v1325_v39 = vld [vmem:[#allocation5 + $0x3a0] sm:$0xff] }
  0xf6   : > { %v852_v57 = vadd.f32 %v819_v53, %v765_v46  ;;  %v853_v58 = vadd.f32 %v845_v54, %v766_v47  ;;  %v1119_v46 = vld [vmem:[#allocation5 + $0x160] sm:$0xff]  ;;  %v1120_v47 = vld [vmem:[#allocation5 + $0x168] sm:$0xff] }
  0xf7   : > { %v1091_v53 = vld [vmem:[#allocation5 + $0x88] sm:$0xff]  ;;  %1154 = vmatpush.msrb.mxu0 %v1119_v46  ;;  %1174 = vmatpush.msrb.mxu1 %v1120_v47  ;;  %v1115_v54 = vld [vmem:[#allocation5 + $0x140] sm:$0xff] }
  0xf8   : > { %v938_v63 = vadd.f32 %v905_v51, %v852_v57  ;;  %v939_v0 = vadd.f32 %v931_v52, %v853_v58  ;;  %v1118_v51 = vld [vmem:[#allocation5 + $0x158] sm:$0xff]  ;;  %v1090_v52 = vld [vmem:[#allocation5 + $0x80] sm:$0xff]  ;;  %v1243_v46 = vld [vmem:[#allocation5 + $0x288] sm:$0xff] }
  0xf9   : > { %v1089_v57 = vld [vmem:[#allocation5 + $0x78] sm:$0xff]  ;;  %1155 = vmatpush.msrb.mxu0 %v1117_v50  ;;  %1175 = vmatpush.msrb.mxu1 %v1118_v51  ;;  %v1321_v47 = vld [vmem:[#allocation5 + $0x380] sm:$0xff]  ;;  %v1319_v51 = vld [vmem:[#allocation5 + $0x370] sm:$0xff] }
  0xfa   : > { %v950_v3 = vadd.f32 %v942_v59, %v938_v63  ;;  %v951_v4 = vadd.f32 %v943_v60, %v939_v0  ;;  %v1977_v58 = vld [vmem:[%s2780_s3 + $0x18] sm:$0xf]  ;;  %v1086_v59 = vld [vmem:[#allocation5 + $0x60] sm:$0xff]  ;;  %v1087_v60 = vld [vmem:[#allocation5 + $0x68] sm:$0xff] }
  0xfb   : > { %1156 = vmatpush.msrb.mxu0 %v1115_v54  ;;  %1176 = vmatpush.msrb.mxu1 %v1116_v55  ;;  %v1084_v63 = vld [vmem:[#allocation5 + $0x50] sm:$0xff]  ;;  %v1085_v0 = vld [vmem:[#allocation5 + $0x58] sm:$0xff]  ;;  %v1239_v54 = vld [vmem:[#allocation5 + $0x268] sm:$0xff] }
  0xfc   : > { %v956_v9 = vmax.f32 %v950_v3, 0.0  ;;  %v957_v10 = vmax.f32 %v951_v4, 0.0  ;;  %v1082_v3 = vld [vmem:[#allocation5 + $0x40] sm:$0xff]  ;;  %v1083_v4 = vld [vmem:[#allocation5 + $0x48] sm:$0xff]  ;;  %v1241_v50 = vld [vmem:[#allocation5 + $0x278] sm:$0xff] }
  0xfd   : > { %1157 = vmatpush.msrb.mxu0 %v1113_v61  ;;  %1177 = vmatpush.msrb.mxu1 %v1114_v62  ;;  %v1317_v55 = vld [vmem:[#allocation5 + $0x360] sm:$0xff]  ;;  %v1235_v62 = vld [vmem:[#allocation5 + $0x248] sm:$0xff] }
  0xfe   : > { %980 = vmatpush.msrb.mxu2 %v956_v9  ;;  %1003 = vmatpush.msrb.mxu3 %v957_v10  ;;  %v1234_v61 = vld [vmem:[#allocation5 + $0x240] sm:$0xff] }
  0xff   : > { %1158 = vmatpush.msrb.mxu0 %v1111_v1  ;;  %1178 = vmatpush.msrb.mxu1 %v1112_v2  ;;  %v1232_v1 = vld [vmem:[#allocation5 + $0x230] sm:$0xff]  ;;  %v1233_v2 = vld [vmem:[#allocation5 + $0x238] sm:$0xff] }
 0x100   : > { %981 = vmatpush.msrb.mxu2 %v954_v14  ;;  %1004 = vmatpush.msrb.mxu3 %v955_v15 }
 0x101   : > { %1159 = vmatpush.msrb.mxu0 %v1109_v5  ;;  %1179 = vmatpush.msrb.mxu1 %v1110_v6  ;;  %v1230_v5 = vld [vmem:[#allocation5 + $0x220] sm:$0xff]  ;;  %v1231_v6 = vld [vmem:[#allocation5 + $0x228] sm:$0xff] }
 0x102   : > { %982 = vmatpush.msrb.mxu2 %v952_v17  ;;  %1005 = vmatpush.msrb.mxu3 %v953_v18 }
 0x103   : > { %1972 = vmatmul.msk.f32.vlgmr.msrb.gmra.mxu2 %vm960_vm5, %v958_v19  ;;  %1974 = vmatmul.msk.f32.vlgmr.msrb.gmra.mxu3 %vm960_vm5, %v958_v19  ;;  %v1335_v19 = vld [vmem:[#allocation5 + $0x3f0] sm:$0xff] }
 0x104   : > { %1035 = vmatpush.msra.mxu2 %v956_v9  ;;  %1058 = vmatpush.msra.mxu3 %v957_v10  ;;  %v1078_v9 = vld [vmem:[#allocation5 + $0x20] sm:$0xff]  ;;  %v1079_v10 = vld [vmem:[#allocation5 + $0x28] sm:$0xff] }
 0x106   : > { %1036 = vmatpush.msra.mxu2 %v954_v14  ;;  %1059 = vmatpush.msra.mxu3 %v955_v15  ;;  %v1107_v14 = vld [vmem:[#allocation5 + $0x100] sm:$0xff]  ;;  %v1108_v15 = vld [vmem:[#allocation5 + $0x108] sm:$0xff] }
 0x107   : > { %1160 = vmatpush.msrb.mxu0 %v1107_v14  ;;  %1180 = vmatpush.msrb.mxu1 %v1108_v15  ;;  %v1226_v14 = vld [vmem:[#allocation5 + $0x200] sm:$0xff]  ;;  %v1227_v15 = vld [vmem:[#allocation5 + $0x208] sm:$0xff] }
 0x108   : > { %1037 = vmatpush.msra.mxu2 %v952_v17  ;;  %1060 = vmatpush.msra.mxu3 %v953_v18  ;;  %v1256_v17 = vld [vmem:[#allocation5 + $0x2f0] sm:$0xff]  ;;  %v1257_v18 = vld [vmem:[#allocation5 + $0x2f8] sm:$0xff] }
 0x109   : > { %1262 = vmatpush.msra.mxu0 %v1256_v17  ;;  %1282 = vmatpush.msra.mxu1 %v1257_v18 }
 0x10a   : > { %1185 = vmatpush.msrb.mxu2 %v1104_v24  ;;  %1205 = vmatpush.msrb.mxu3 %v1105_v25  ;;  %v1334_v24 = vld [vmem:[#allocation5 + $0x3e8] sm:$0xff]  ;;  %v1252_v25 = vld [vmem:[#allocation5 + $0x2d0] sm:$0xff] }
 0x10b   : > { %1973 = vmatmul.msk.f32.gmra.mxu2 %vm960_vm5, %v959_v28  ;;  %1975 = vmatmul.msk.f32.gmra.mxu3 %vm960_vm5, %v959_v28  ;;  %v1332_v28 = vld [vmem:[#allocation5 + $0x3d8] sm:$0xff] }
 0x10c   : > { %1186 = vmatpush.msrb.mxu2 %v1102_v29  ;;  %1206 = vmatpush.msrb.mxu3 %v1103_v30  ;;  %v1250_v29 = vld [vmem:[#allocation5 + $0x2c0] sm:$0xff]  ;;  %v1251_v30 = vld [vmem:[#allocation5 + $0x2c8] sm:$0xff] }
 0x10d   : > { %1263 = vmatpush.msra.mxu0 %v1254_v21  ;;  %1283 = vmatpush.msra.mxu1 %v1255_v22 }
 0x10e   : > { %1187 = vmatpush.msrb.mxu2 %v1100_v33  ;;  %1207 = vmatpush.msrb.mxu3 %v1101_v34  ;;  %v1248_v33 = vld [vmem:[#allocation5 + $0x2b0] sm:$0xff]  ;;  %v1249_v34 = vld [vmem:[#allocation5 + $0x2b8] sm:$0xff] }
 0x10f   : > { %1264 = vmatpush.msra.mxu0 %v1252_v25  ;;  %1284 = vmatpush.msra.mxu1 %v1253_v26 }
 0x110   : > { %1188 = vmatpush.msrb.mxu2 %v1098_v37  ;;  %1208 = vmatpush.msrb.mxu3 %v1099_v38  ;;  %v1246_v37 = vld [vmem:[#allocation5 + $0x2a0] sm:$0xff]  ;;  %v1247_v38 = vld [vmem:[#allocation5 + $0x2a8] sm:$0xff] }
 0x111   : > { %1265 = vmatpush.msra.mxu0 %v1250_v29  ;;  %1285 = vmatpush.msra.mxu1 %v1251_v30 }
 0x112   : > { %1189 = vmatpush.msrb.mxu2 %v1096_v41  ;;  %1209 = vmatpush.msrb.mxu3 %v1097_v42  ;;  %v1244_v41 = vld [vmem:[#allocation5 + $0x290] sm:$0xff]  ;;  %v1245_v42 = vld [vmem:[#allocation5 + $0x298] sm:$0xff] }
 0x113   : > { %1978 = vmatmul.msk.f32.vlgmr.msra.gmra.mxu2 %vm960_vm5, %v1976_v43  ;;  %1980 = vmatmul.msk.f32.vlgmr.msra.gmra.mxu3 %vm960_vm5, %v1976_v43  ;;  %v1323_v43 = vld [vmem:[#allocation5 + $0x390] sm:$0xff] }
 0x114   : > { %1190 = vmatpush.msrb.mxu2 %v1094_v44  ;;  %1210 = vmatpush.msrb.mxu3 %v1095_v45  ;;  %v1324_v44 = vld [vmem:[#allocation5 + $0x398] sm:$0xff]  ;;  %v1242_v45 = vld [vmem:[#allocation5 + $0x280] sm:$0xff] }
 0x115   : > { %1266 = vmatpush.msra.mxu0 %v1248_v33  ;;  %1286 = vmatpush.msra.mxu1 %v1249_v34 }
 0x116   : > { %1191 = vmatpush.msrb.mxu2 %v1092_v48  ;;  %1211 = vmatpush.msrb.mxu3 %v1093_v49  ;;  %v1322_v48 = vld [vmem:[#allocation5 + $0x388] sm:$0xff]  ;;  %v1240_v49 = vld [vmem:[#allocation5 + $0x270] sm:$0xff] }
 0x117   : > { %1267 = vmatpush.msra.mxu0 %v1246_v37  ;;  %1287 = vmatpush.msra.mxu1 %v1247_v38  ;;  %v1414_v37 = vld [vmem:[#allocation5 + $0x4f0] sm:$0xff]  ;;  %v1415_v38 = vld [vmem:[#allocation5 + $0x4f8] sm:$0xff] }
 0x118   : > { %1192 = vmatpush.msrb.mxu2 %v1090_v52  ;;  %1212 = vmatpush.msrb.mxu3 %v1091_v53  ;;  %v1320_v52 = vld [vmem:[#allocation5 + $0x378] sm:$0xff]  ;;  %v1238_v53 = vld [vmem:[#allocation5 + $0x260] sm:$0xff] }
 0x119   : > { %1268 = vmatpush.msra.mxu0 %v1244_v41  ;;  %1288 = vmatpush.msra.mxu1 %v1245_v42  ;;  %v1410_v41 = vld [vmem:[#allocation5 + $0x4d0] sm:$0xff]  ;;  %v1411_v42 = vld [vmem:[#allocation5 + $0x4d8] sm:$0xff] }
 0x11a   : > { %1193 = vmatpush.msrb.mxu2 %v1088_v56  ;;  %1213 = vmatpush.msrb.mxu3 %v1089_v57  ;;  %v1318_v56 = vld [vmem:[#allocation5 + $0x368] sm:$0xff]  ;;  %v1236_v57 = vld [vmem:[#allocation5 + $0x250] sm:$0xff] }
 0x11b   : > { %1979 = vmatmul.msk.f32.gmra.mxu2 %vm960_vm5, %v1977_v58  ;;  %1981 = vmatmul.msk.f32.gmra.mxu3 %vm960_vm5, %v1977_v58  ;;  %v1237_v58 = vld [vmem:[#allocation5 + $0x258] sm:$0xff] }
 0x11c   : > { %1194 = vmatpush.msrb.mxu2 %v1086_v59  ;;  %1214 = vmatpush.msrb.mxu3 %v1087_v60  ;;  %v1315_v59 = vld [vmem:[#allocation5 + $0x350] sm:$0xff]  ;;  %v1316_v60 = vld [vmem:[#allocation5 + $0x358] sm:$0xff] }
 0x11d   : > { %1269 = vmatpush.msra.mxu0 %v1242_v45  ;;  %1289 = vmatpush.msra.mxu1 %v1243_v46  ;;  %v1409_v45 = vld [vmem:[#allocation5 + $0x4c8] sm:$0xff] }
 0x11e   : > { %1195 = vmatpush.msrb.mxu2 %v1084_v63  ;;  %1215 = vmatpush.msrb.mxu3 %v1085_v0  ;;  %v1313_v63 = vld [vmem:[#allocation5 + $0x340] sm:$0xff]  ;;  %v1314_v0 = vld [vmem:[#allocation5 + $0x348] sm:$0xff] }
 0x11f   : > { %1270 = vmatpush.msra.mxu0 %v1240_v49  ;;  %1290 = vmatpush.msra.mxu1 %v1241_v50  ;;  %v1404_v50 = vld [vmem:[#allocation5 + $0x4a0] sm:$0xff] }
 0x120   : > { %1196 = vmatpush.msrb.mxu2 %v1082_v3  ;;  %1216 = vmatpush.msrb.mxu3 %v1083_v4  ;;  %v1311_v3 = vld [vmem:[#allocation5 + $0x330] sm:$0xff]  ;;  %v1312_v4 = vld [vmem:[#allocation5 + $0x338] sm:$0xff] }
 0x121   : > { %1271 = vmatpush.msra.mxu0 %v1238_v53  ;;  %1291 = vmatpush.msra.mxu1 %v1239_v54  ;;  %v1403_v53 = vld [vmem:[#allocation5 + $0x498] sm:$0xff]  ;;  %v1400_v54 = vld [vmem:[#allocation5 + $0x480] sm:$0xff] }
 0x122   : > { %1197 = vmatpush.msrb.mxu2 %v1080_v7  ;;  %1217 = vmatpush.msrb.mxu3 %v1081_v8  ;;  %v1309_v7 = vld [vmem:[#allocation5 + $0x320] sm:$0xff]  ;;  %v1310_v8 = vld [vmem:[#allocation5 + $0x328] sm:$0xff] }
 0x123   : > { %1272 = vmatpush.msra.mxu0 %v1236_v57  ;;  %1292 = vmatpush.msra.mxu1 %v1237_v58  ;;  %v1399_v57 = vld [vmem:[#allocation5 + $0x478] sm:$0xff]  ;;  %v1396_v58 = vld [vmem:[#allocation5 + $0x460] sm:$0xff] }
 0x124   : > { %1198 = vmatpush.msrb.mxu2 %v1078_v9  ;;  %1218 = vmatpush.msrb.mxu3 %v1079_v10  ;;  %v1228_v9 = vld [vmem:[#allocation5 + $0x210] sm:$0xff]  ;;  %v1229_v10 = vld [vmem:[#allocation5 + $0x218] sm:$0xff] }
 0x125   : > { %1273 = vmatpush.msra.mxu0 %v1234_v61  ;;  %1293 = vmatpush.msra.mxu1 %v1235_v62  ;;  %v1395_v61 = vld [vmem:[#allocation5 + $0x458] sm:$0xff]  ;;  %v1392_v62 = vld [vmem:[#allocation5 + $0x440] sm:$0xff] }
 0x126   : > { %1199 = vmatpush.msrb.mxu2 %v1076_v11  ;;  %1219 = vmatpush.msrb.mxu3 %v1077_v13  ;;  %v1307_v11 = vld [vmem:[#allocation5 + $0x310] sm:$0xff]  ;;  %v1308_v13 = vld [vmem:[#allocation5 + $0x318] sm:$0xff] }
 0x127   : > { %1274 = vmatpush.msra.mxu0 %v1232_v1  ;;  %1294 = vmatpush.msra.mxu1 %v1233_v2  ;;  %v1391_v1 = vld [vmem:[#allocation5 + $0x438] sm:$0xff]  ;;  %v1388_v2 = vld [vmem:[#allocation5 + $0x420] sm:$0xff] }
 0x128   : > { %1200 = vmatpush.msrb.mxu2 %v1074_v12  ;;  %1220 = vmatpush.msrb.mxu3 %v1075_v16  ;;  %v1305_v12 = vld [vmem:[#allocation5 + $0x300] sm:$0xff]  ;;  %v1306_v16 = vld [vmem:[#allocation5 + $0x308] sm:$0xff] }
 0x129   : > { %1275 = vmatpush.msra.mxu0 %v1230_v5  ;;  %1295 = vmatpush.msra.mxu1 %v1231_v6  ;;  %v1387_v5 = vld [vmem:[#allocation5 + $0x418] sm:$0xff] }
 0x12a   : > { %1341 = vmatpush.msra.mxu2 %v1335_v19  ;;  %1361 = vmatpush.msra.mxu3 %v1336_v20 }
 0x12b   : > { %1276 = vmatpush.msra.mxu0 %v1228_v9  ;;  %1296 = vmatpush.msra.mxu1 %v1229_v10 }
 0x12c   : > { %1342 = vmatpush.msra.mxu2 %v1333_v23  ;;  %1362 = vmatpush.msra.mxu3 %v1334_v24 }
 0x12d   : > { %1277 = vmatpush.msra.mxu0 %v1226_v14  ;;  %1297 = vmatpush.msra.mxu1 %v1227_v15  ;;  %v1580_v14 = vld [vmem:[#allocation7 + $0x78] sm:$0xff]  ;;  %v1579_v15 = vld [vmem:[#allocation7 + $0x70] sm:$0xff] }
 0x12e   : > { %1343 = vmatpush.msra.mxu2 %v1331_v27  ;;  %1363 = vmatpush.msra.mxu3 %v1332_v28 }
 0x130   : > { %1344 = vmatpush.msra.mxu2 %v1329_v31  ;;  %1364 = vmatpush.msra.mxu3 %v1330_v32 }
 0x132   : > { %1345 = vmatpush.msra.mxu2 %v1327_v35  ;;  %1365 = vmatpush.msra.mxu3 %v1328_v36 }
 0x134   : > { %1346 = vmatpush.msra.mxu2 %v1325_v39  ;;  %1366 = vmatpush.msra.mxu3 %v1326_v40  ;;  %v1412_v39 = vld [vmem:[#allocation5 + $0x4e0] sm:$0xff]  ;;  %v1413_v40 = vld [vmem:[#allocation5 + $0x4e8] sm:$0xff] }
 0x136   : > { %1347 = vmatpush.msra.mxu2 %v1323_v43  ;;  %1367 = vmatpush.msra.mxu3 %v1324_v44  ;;  %v1408_v44 = vld [vmem:[#allocation5 + $0x4c0] sm:$0xff] }
 0x138   : > { %1348 = vmatpush.msra.mxu2 %v1321_v47  ;;  %1368 = vmatpush.msra.mxu3 %v1322_v48  ;;  %v1406_v47 = vld [vmem:[#allocation5 + $0x4b0] sm:$0xff]  ;;  %v1407_v48 = vld [vmem:[#allocation5 + $0x4b8] sm:$0xff] }
 0x13a   : > { %1349 = vmatpush.msra.mxu2 %v1319_v51  ;;  %1369 = vmatpush.msra.mxu3 %v1320_v52  ;;  %v1405_v51 = vld [vmem:[#allocation5 + $0x4a8] sm:$0xff]  ;;  %v1402_v52 = vld [vmem:[#allocation5 + $0x490] sm:$0xff] }
 0x13c   : > { %1350 = vmatpush.msra.mxu2 %v1317_v55  ;;  %1370 = vmatpush.msra.mxu3 %v1318_v56  ;;  %v1401_v55 = vld [vmem:[#allocation5 + $0x488] sm:$0xff]  ;;  %v1398_v56 = vld [vmem:[#allocation5 + $0x470] sm:$0xff] }
 0x13e   : > { %1351 = vmatpush.msra.mxu2 %v1315_v59  ;;  %1371 = vmatpush.msra.mxu3 %v1316_v60  ;;  %v1397_v59 = vld [vmem:[#allocation5 + $0x468] sm:$0xff]  ;;  %v1394_v60 = vld [vmem:[#allocation5 + $0x450] sm:$0xff] }
 0x140   : > { %1352 = vmatpush.msra.mxu2 %v1313_v63  ;;  %1372 = vmatpush.msra.mxu3 %v1314_v0  ;;  %v1393_v63 = vld [vmem:[#allocation5 + $0x448] sm:$0xff]  ;;  %v1390_v0 = vld [vmem:[#allocation5 + $0x430] sm:$0xff] }
 0x142   : > { %1353 = vmatpush.msra.mxu2 %v1311_v3  ;;  %1373 = vmatpush.msra.mxu3 %v1312_v4  ;;  %v1389_v3 = vld [vmem:[#allocation5 + $0x428] sm:$0xff]  ;;  %v1386_v4 = vld [vmem:[#allocation5 + $0x410] sm:$0xff] }
 0x144   : > { %1354 = vmatpush.msra.mxu2 %v1309_v7  ;;  %1374 = vmatpush.msra.mxu3 %v1310_v8  ;;  %v1384_v7 = vld [vmem:[#allocation5 + $0x400] sm:$0xff]  ;;  %v1385_v8 = vld [vmem:[#allocation5 + $0x408] sm:$0xff] }
 0x146   : > { %1355 = vmatpush.msra.mxu2 %v1307_v11  ;;  %1375 = vmatpush.msra.mxu3 %v1308_v13 }
 0x148   : > { %1356 = vmatpush.msra.mxu2 %v1305_v12  ;;  %1376 = vmatpush.msra.mxu3 %v1306_v16  ;;  %v1596_v12 = vld [vmem:[#allocation7 + $0xf8] sm:$0xff]  ;;  %v1578_v16 = vld [vmem:[#allocation7 + $0x68] sm:$0xff] }
 0x186   : > { %v984_v17 = vpop.f32.mrf.mxu2  ;;  %v1007_v18 = vpop.f32.mrf.mxu3 }
 0x18e   : > { %v987_v19 = vpop.f32.mrf.mxu2  ;;  %v1010_v20 = vpop.f32.mrf.mxu3 }
 0x196   : > { %v1039_v21 = vpop.f32.mrf.mxu2  ;;  %v1062_v22 = vpop.f32.mrf.mxu3 }
 0x197   : > { %v1068_v23 = vmax.f32 %v984_v17, %v1039_v21  ;;  %v1069_v24 = vmax.f32 %v1007_v18, %v1062_v22  ;;  %v1595_v17 = vld [vmem:[#allocation7 + $0xf0] sm:$0xff]  ;;  %v1577_v18 = vld [vmem:[#allocation7 + $0x60] sm:$0xff] }
 0x198   : > { %v1593_v22 = vld [vmem:[#allocation7 + $0xe0] sm:$0xff] }
 0x199   : > { %v2615_v25 = vmax.f32 %v1068_v23, %v1069_v24  ;;  %v1576_v23 = vld [vmem:[#allocation7 + $0x58] sm:$0xff] }
 0x19b   : > { %1201 = vmatmul.f32.vlgmr.msrb.gmra.mxu2 %v2615_v25  ;;  %1221 = vmatmul.f32.vlgmr.msrb.gmra.mxu3 %v2615_v25  ;;  %v1141_v31 = vrot.slane %v2615_v25, 1  ;;  %v1337_v33 = vrot.slane %v2615_v25, 3  ;;  %v1258_v46 = vrot.slane %v2615_v25, 2  ;;  %v1416_v9 = vrot.slane %v2615_v25, 4 }
 0x19e   : > { %v1042_v26 = vpop.f32.mrf.mxu2  ;;  %v1065_v27 = vpop.f32.mrf.mxu3 }
 0x19f   : > { %v1070_v28 = vmax.f32 %v987_v19, %v1042_v26  ;;  %v1071_v29 = vmax.f32 %v1010_v20, %v1065_v27  ;;  %v1594_v19 = vld [vmem:[#allocation7 + $0xe8] sm:$0xff]  ;;  %v1592_v26 = vld [vmem:[#allocation7 + $0xd8] sm:$0xff] }
 0x1a1   : > { %v2619_v30 = vmax.f32 %v1070_v28, %v1071_v29  ;;  %v1575_v29 = vld [vmem:[#allocation7 + $0x50] sm:$0xff] }
 0x1a3   : > { %v1142_v32 = vrot.slane %v2619_v30, 1  ;;  %v1338_v34 = vrot.slane %v2619_v30, 3  ;;  %v1259_v43 = vrot.slane %v2619_v30, 2  ;;  %v1417_v6 = vrot.slane %v2619_v30, 4  ;;  %v1591_v30 = vld [vmem:[#allocation7 + $0xd0] sm:$0xff] }
 0x1a5   : > { %v1143_v35 = vsel %vm542_vm1, %v1141_v31, %v1142_v32  ;;  %v1339_v36 = vsel %vm776_vm4, %v1337_v33, %v1338_v34  ;;  %v1260_v49 = vsel %vm689_vm3, %v1258_v46, %v1259_v43  ;;  %v1418_v10 = vsel %vm557_vm0, %v1416_v9, %v1417_v6  ;;  %v1574_v33 = vld [vmem:[#allocation7 + $0x48] sm:$0xff]  ;;  %v1462_v34 = vld [vmem:[%s2782_s5] sm:$0x3]  ;;  %v1571_v9 = vld [vmem:[#allocation7 + $0x30] sm:$0xff] }
 0x1a6   : > { %1161 = vmatmul.f32.vlgmr.msrb.gmra.mxu0 %v1143_v35  ;;  %1181 = vmatmul.f32.vlgmr.msrb.gmra.mxu1 %v1143_v35  ;;  %v1589_v6 = vld [vmem:[#allocation7 + $0xc0] sm:$0xff] }
 0x1a7   : > { %1357 = vmatmul.f32.vlgmr.msra.gmra.mxu2 %v1339_v36  ;;  %1377 = vmatmul.f32.vlgmr.msra.gmra.mxu3 %v1339_v36 }
 0x1a8   : > { %1420 = vmatpush.msrb.mxu0 %v1414_v37  ;;  %1440 = vmatpush.msrb.mxu1 %v1415_v38  ;;  %v1464_v38 = vperm.slane %v1462_v34, 0 }
 0x1aa   : > { %1421 = vmatpush.msrb.mxu0 %v1412_v39  ;;  %1441 = vmatpush.msrb.mxu1 %v1413_v40  ;;  %v1465_v40 = vperm.slane %v1462_v34, 1  ;;  %v1565_v34 = vld [vmem:[#allocation7] sm:$0xff] }
 0x1ac   : > { %1422 = vmatpush.msrb.mxu0 %v1410_v41  ;;  %1442 = vmatpush.msrb.mxu1 %v1411_v42 }
 0x1ae   : > { %1423 = vmatpush.msrb.mxu0 %v1408_v44  ;;  %1443 = vmatpush.msrb.mxu1 %v1409_v45 }
 0x1af   : > { %1278 = vmatmul.f32.vlgmr.msra.gmra.mxu0 %v1260_v49  ;;  %1298 = vmatmul.f32.vlgmr.msra.gmra.mxu1 %v1260_v49  ;;  %v1472_v49 = vld [vmem:[%s2783_s6] sm:$0xf] }
 0x1b0   : > { %1424 = vmatpush.msrb.mxu0 %v1406_v47  ;;  %1444 = vmatpush.msrb.mxu1 %v1407_v48 }
 0x1b2   : > { %1425 = vmatpush.msrb.mxu0 %v1404_v50  ;;  %1445 = vmatpush.msrb.mxu1 %v1405_v51  ;;  %v1612_v50 = vld [vmem:[#allocation7 + $0x178] sm:$0xff] }
 0x1b3   : > { %v1628_v51 = vld [vmem:[#allocation7 + $0x1f8] sm:$0xff] }
 0x1b4   : > { %1426 = vmatpush.msrb.mxu0 %v1402_v52  ;;  %1446 = vmatpush.msrb.mxu1 %v1403_v53  ;;  %v1611_v52 = vld [vmem:[#allocation7 + $0x170] sm:$0xff] }
 0x1b5   : > { %v1627_v53 = vld [vmem:[#allocation7 + $0x1f0] sm:$0xff] }
 0x1b6   : > { %1427 = vmatpush.msrb.mxu0 %v1400_v54  ;;  %1447 = vmatpush.msrb.mxu1 %v1401_v55  ;;  %v1610_v54 = vld [vmem:[#allocation7 + $0x168] sm:$0xff] }
 0x1b7   : > { %v1626_v55 = vld [vmem:[#allocation7 + $0x1e8] sm:$0xff] }
 0x1b8   : > { %1428 = vmatpush.msrb.mxu0 %v1398_v56  ;;  %1448 = vmatpush.msrb.mxu1 %v1399_v57  ;;  %v1609_v56 = vld [vmem:[#allocation7 + $0x160] sm:$0xff] }
 0x1b9   : > { %v1625_v57 = vld [vmem:[#allocation7 + $0x1e0] sm:$0xff] }
 0x1ba   : > { %1429 = vmatpush.msrb.mxu0 %v1396_v58  ;;  %1449 = vmatpush.msrb.mxu1 %v1397_v59  ;;  %v1984_v58 = vld [vmem:[%s2783_s6 + $0x4] sm:$0xf]  ;;  %v1608_v59 = vld [vmem:[#allocation7 + $0x158] sm:$0xff] }
 0x1bc   : > { %1430 = vmatpush.msrb.mxu0 %v1394_v60  ;;  %1450 = vmatpush.msrb.mxu1 %v1395_v61  ;;  %v1624_v60 = vld [vmem:[#allocation7 + $0x1d8] sm:$0xff]  ;;  %v1607_v61 = vld [vmem:[#allocation7 + $0x150] sm:$0xff] }
 0x1be   : > { %1431 = vmatpush.msrb.mxu0 %v1392_v62  ;;  %1451 = vmatpush.msrb.mxu1 %v1393_v63  ;;  %v1623_v62 = vld [vmem:[#allocation7 + $0x1d0] sm:$0xff]  ;;  %v1606_v63 = vld [vmem:[#allocation7 + $0x148] sm:$0xff] }
 0x1c0   : > { %1432 = vmatpush.msrb.mxu0 %v1390_v0  ;;  %1452 = vmatpush.msrb.mxu1 %v1391_v1  ;;  %v1622_v0 = vld [vmem:[#allocation7 + $0x1c8] sm:$0xff]  ;;  %v1605_v1 = vld [vmem:[#allocation7 + $0x140] sm:$0xff] }
 0x1c2   : > { %1433 = vmatpush.msrb.mxu0 %v1388_v2  ;;  %1453 = vmatpush.msrb.mxu1 %v1389_v3  ;;  %v1573_v2 = vld [vmem:[#allocation7 + $0x40] sm:$0xff]  ;;  %v1590_v3 = vld [vmem:[#allocation7 + $0xc8] sm:$0xff] }
 0x1c4   : > { %1434 = vmatpush.msrb.mxu0 %v1386_v4  ;;  %1454 = vmatpush.msrb.mxu1 %v1387_v5  ;;  %v1621_v4 = vld [vmem:[#allocation7 + $0x1c0] sm:$0xff]  ;;  %v1572_v5 = vld [vmem:[#allocation7 + $0x38] sm:$0xff] }
 0x1c6   : > { %1435 = vmatpush.msrb.mxu0 %v1384_v7  ;;  %1455 = vmatpush.msrb.mxu1 %v1385_v8  ;;  %v1604_v7 = vld [vmem:[#allocation7 + $0x138] sm:$0xff] }
 0x1c7   : > { %1436 = vmatmul.f32.vlgmr.msrb.gmra.mxu0 %v1418_v10  ;;  %1456 = vmatmul.f32.vlgmr.msrb.gmra.mxu1 %v1418_v10  ;;  %v1620_v8 = vld [vmem:[#allocation7 + $0x1b8] sm:$0xff]  ;;  %v1603_v10 = vld [vmem:[#allocation7 + $0x130] sm:$0xff] }
 0x1c8   : > { %1630 = vmatpush.msra.mxu0 %v1580_v14  ;;  %1654 = vmatpush.msra.mxu1 %v1596_v12  ;;  %v1619_v14 = vld [vmem:[#allocation7 + $0x1b0] sm:$0xff] }
 0x1c9   : > { %v1587_v12 = vld [vmem:[#allocation7 + $0xb0] sm:$0xff] }
 0x1ca   : > { %1631 = vmatpush.msra.mxu0 %v1579_v15  ;;  %1655 = vmatpush.msra.mxu1 %v1595_v17  ;;  %v1570_v15 = vld [vmem:[#allocation7 + $0x28] sm:$0xff]  ;;  %v1601_v17 = vld [vmem:[#allocation7 + $0x120] sm:$0xff] }
 0x1cc   : > { %1632 = vmatpush.msra.mxu0 %v1578_v16  ;;  %1656 = vmatpush.msra.mxu1 %v1594_v19  ;;  %v1618_v16 = vld [vmem:[#allocation7 + $0x1a8] sm:$0xff] }
 0x1cd   : > { %v1586_v19 = vld [vmem:[#allocation7 + $0xa8] sm:$0xff] }
 0x1ce   : > { %1633 = vmatpush.msra.mxu0 %v1577_v18  ;;  %1657 = vmatpush.msra.mxu1 %v1593_v22  ;;  %v1569_v18 = vld [vmem:[#allocation7 + $0x20] sm:$0xff] }
 0x1cf   : > { %v1585_v22 = vld [vmem:[#allocation7 + $0xa0] sm:$0xff] }
 0x1d0   : > { %1634 = vmatpush.msra.mxu0 %v1576_v23  ;;  %1658 = vmatpush.msra.mxu1 %v1592_v26  ;;  %v1600_v23 = vld [vmem:[#allocation7 + $0x118] sm:$0xff] }
 0x1d1   : > { %v1584_v26 = vld [vmem:[#allocation7 + $0x98] sm:$0xff] }
 0x1d2   : > { %1635 = vmatpush.msra.mxu0 %v1575_v29  ;;  %1659 = vmatpush.msra.mxu1 %v1591_v30  ;;  %v1566_v29 = vld [vmem:[#allocation7 + $0x8] sm:$0xff]  ;;  %v1583_v30 = vld [vmem:[#allocation7 + $0x90] sm:$0xff] }
 0x1d4   : > { %1636 = vmatpush.msra.mxu0 %v1574_v33  ;;  %1660 = vmatpush.msra.mxu1 %v1590_v3  ;;  %v1614_v33 = vld [vmem:[#allocation7 + $0x188] sm:$0xff]  ;;  %v1772_v3 = vld [vmem:[%s2788_s11 + $0x60] sm:$0xff] }
 0x1d6   : > { %1637 = vmatpush.msra.mxu0 %v1573_v2  ;;  %1661 = vmatpush.msra.mxu1 %v1589_v6  ;;  %v1773_v2 = vld [vmem:[%s2788_s11 + $0x68] sm:$0xff] }
 0x1d7   : > { %v1769_v6 = vld [vmem:[%s2788_s11 + $0x48] sm:$0xff] }
 0x1d8   : > { %1638 = vmatpush.msra.mxu0 %v1572_v5  ;;  %v1770_v5 = vld [vmem:[%s2788_s11 + $0x50] sm:$0xff] }
 0x1da   : > { %1639 = vmatpush.msra.mxu0 %v1571_v9  ;;  %v1766_v9 = vld [vmem:[%s2788_s11 + $0x30] sm:$0xff] }
 0x1dc   : > { %1640 = vmatpush.msra.mxu0 %v1570_v15  ;;  %v1764_v15 = vld [vmem:[%s2788_s11 + $0x20] sm:$0xff] }
 0x1de   : > { %1641 = vmatpush.msra.mxu0 %v1569_v18 }
 0x21e   : > { %v1202_v20 = vpop.f32.mrf.mxu2  ;;  %v1222_v21 = vpop.f32.mrf.mxu3 }
 0x223   : > { %v1162_v11 = vpop.f32.mrf.mxu0  ;;  %v1182_v13 = vpop.f32.mrf.mxu1 }
 0x224   : > { %v1203_v27 = vadd.f32 %v1202_v20, %v1162_v11  ;;  %v1223_v28 = vadd.f32 %v1222_v21, %v1182_v13  ;;  %v1588_v11 = vld [vmem:[#allocation7 + $0xb8] sm:$0xff]  ;;  %v1602_v13 = vld [vmem:[#allocation7 + $0x128] sm:$0xff]  ;;  %v1617_v20 = vld [vmem:[#allocation7 + $0x1a0] sm:$0xff] }
 0x225   : > { %1662 = vmatpush.msra.mxu1 %v1588_v11  ;;  %v1568_v21 = vld [vmem:[#allocation7 + $0x18] sm:$0xff] }
 0x226   : > { %1642 = vmatpush.msra.mxu0 %v1568_v21 }
 0x227   : > { %1663 = vmatpush.msra.mxu1 %v1587_v12 }
 0x229   : > { %1664 = vmatpush.msra.mxu1 %v1586_v19 }
 0x22a   : > { %v1358_v35 = vpop.f32.mrf.mxu2  ;;  %v1378_v36 = vpop.f32.mrf.mxu3 }
 0x22b   : > { %1665 = vmatpush.msra.mxu1 %v1585_v22 }
 0x22c   : > { %v1279_v24 = vpop.f32.mrf.mxu0  ;;  %v1299_v25 = vpop.f32.mrf.mxu1 }
 0x22d   : > { %v1302_v31 = vadd.f32 %v1279_v24, %v1203_v27  ;;  %v1303_v32 = vadd.f32 %v1299_v25, %v1223_v28  ;;  %v1616_v24 = vld [vmem:[#allocation7 + $0x198] sm:$0xff]  ;;  %v1567_v25 = vld [vmem:[#allocation7 + $0x10] sm:$0xff]  ;;  %1666 = vmatpush.msra.mxu1 %v1584_v26  ;;  %v1738_v26 = vld [vmem:[#allocation8] sm:$0x1] }
 0x22e   : > { %v1599_v27 = vld [vmem:[#allocation7 + $0x110] sm:$0xff]  ;;  %1643 = vmatpush.msra.mxu0 %v1567_v25  ;;  %v1760_v25 = vld [vmem:[%s2788_s11] sm:$0xff] }
 0x22f   : > { %v1381_v37 = vadd.f32 %v1358_v35, %v1302_v31  ;;  %v1382_v39 = vadd.f32 %v1378_v36, %v1303_v32  ;;  %v1615_v28 = vld [vmem:[#allocation7 + $0x190] sm:$0xff]  ;;  %v1598_v31 = vld [vmem:[#allocation7 + $0x108] sm:$0xff]  ;;  %1667 = vmatpush.msra.mxu1 %v1583_v30  ;;  %v1597_v32 = vld [vmem:[#allocation7 + $0x100] sm:$0xff] }
 0x230   : > { %1644 = vmatpush.msra.mxu0 %v1566_v29  ;;  %v1582_v35 = vld [vmem:[#allocation7 + $0x88] sm:$0xff]  ;;  %v1613_v36 = vld [vmem:[#allocation7 + $0x180] sm:$0xff] }
 0x231   : > { %1668 = vmatpush.msra.mxu1 %v1582_v35  ;;  %v1776_v30 = vld [vmem:[#allocation10] sm:$0x1] }
 0x232   : > { %1645 = vmatpush.msra.mxu0 %v1565_v34 }
 0x244   : > { %v1437_v41 = vpop.f32.mrf.mxu0  ;;  %v1457_v42 = vpop.f32.mrf.mxu1 }
 0x245   : > { %v1460_v43 = vadd.f32 %v1437_v41, %v1381_v37  ;;  %v1461_v44 = vadd.f32 %v1457_v42, %v1382_v39  ;;  %v1581_v37 = vld [vmem:[#allocation7 + $0x80] sm:$0xff]  ;;  %v1736_v39 = vld [vmem:[%s2786_s9 + $0x70] sm:$0xff]  ;;  %v1733_v42 = vld [vmem:[%s2786_s9 + $0x58] sm:$0xff] }
 0x246   : > { %1669 = vmatpush.msra.mxu1 %v1581_v37  ;;  %v1734_v41 = vld [vmem:[%s2786_s9 + $0x60] sm:$0xff] }
 0x247   : > { %v1468_v45 = vadd.f32 %v1464_v38, %v1460_v43  ;;  %v1469_v46 = vadd.f32 %v1465_v40, %v1461_v44  ;;  %v1737_v38 = vld [vmem:[%s2786_s9 + $0x78] sm:$0xff]  ;;  %v1735_v40 = vld [vmem:[%s2786_s9 + $0x68] sm:$0xff]  ;;  %v1732_v43 = vld [vmem:[%s2786_s9 + $0x50] sm:$0xff] }
 0x248   : > { %1739 = vmatpush.msrb.mxu0 %v1737_v38  ;;  %v1731_v44 = vld [vmem:[%s2786_s9 + $0x48] sm:$0xff] }
 0x249   : > { %v1470_v47 = vmax.f32 %v1468_v45, 0.0  ;;  %v1471_v48 = vmax.f32 %v1469_v46, 0.0  ;;  %v1730_v45 = vld [vmem:[%s2786_s9 + $0x40] sm:$0xff]  ;;  %v1729_v46 = vld [vmem:[%s2786_s9 + $0x38] sm:$0xff] }
 0x24a   : > { %1740 = vmatpush.msrb.mxu0 %v1736_v39 }
 0x24b   : > { %1492 = vmatpush.msrb.mxu2 %v1470_v47  ;;  %1512 = vmatpush.msrb.mxu3 %v1471_v48 }
 0x24c   : > { %1982 = vmatmul.msk.f32.vlgmr.msrb.gmra.mxu2 %vm1473_vm6, %v1472_v49  ;;  %1983 = vmatmul.msk.f32.vlgmr.msrb.gmra.mxu3 %vm1473_vm6, %v1472_v49  ;;  %v1728_v49 = vld [vmem:[%s2786_s9 + $0x30] sm:$0xff] }
 0x24d   : > { %1537 = vmatpush.msra.mxu2 %v1470_v47  ;;  %1557 = vmatpush.msra.mxu3 %v1471_v48 }
 0x24e   : > { %1741 = vmatpush.msrb.mxu0 %v1735_v40 }
 0x24f   : > { %1677 = vmatpush.msrb.mxu2 %v1612_v50  ;;  %1700 = vmatpush.msrb.mxu3 %v1628_v51 }
 0x250   : > { %1742 = vmatpush.msrb.mxu0 %v1734_v41 }
 0x251   : > { %1678 = vmatpush.msrb.mxu2 %v1611_v52  ;;  %1701 = vmatpush.msrb.mxu3 %v1627_v53 }
 0x252   : > { %1743 = vmatpush.msrb.mxu0 %v1733_v42 }
 0x253   : > { %1679 = vmatpush.msrb.mxu2 %v1610_v54  ;;  %1702 = vmatpush.msrb.mxu3 %v1626_v55 }
 0x254   : > { %1985 = vmatmul.msk.f32.vlgmr.msra.gmra.mxu2 %vm1473_vm6, %v1984_v58  ;;  %1986 = vmatmul.msk.f32.vlgmr.msra.gmra.mxu3 %vm1473_vm6, %v1984_v58  ;;  %v1727_v58 = vld [vmem:[%s2786_s9 + $0x28] sm:$0xff] }
 0x255   : > { %1680 = vmatpush.msrb.mxu2 %v1609_v56  ;;  %1703 = vmatpush.msrb.mxu3 %v1625_v57 }
 0x256   : > { %1744 = vmatpush.msrb.mxu0 %v1732_v43 }
 0x257   : > { %1681 = vmatpush.msrb.mxu2 %v1608_v59  ;;  %1704 = vmatpush.msrb.mxu3 %v1624_v60  ;;  %v1726_v59 = vld [vmem:[%s2786_s9 + $0x20] sm:$0xff]  ;;  %v1725_v60 = vld [vmem:[%s2786_s9 + $0x18] sm:$0xff] }
 0x258   : > { %1745 = vmatpush.msrb.mxu0 %v1731_v44 }
 0x259   : > { %1682 = vmatpush.msrb.mxu2 %v1607_v61  ;;  %1705 = vmatpush.msrb.mxu3 %v1623_v62  ;;  %v1724_v61 = vld [vmem:[%s2786_s9 + $0x10] sm:$0xff]  ;;  %v1723_v62 = vld [vmem:[%s2786_s9 + $0x8] sm:$0xff] }
 0x25a   : > { %1746 = vmatpush.msrb.mxu0 %v1730_v45 }
 0x25b   : > { %1683 = vmatpush.msrb.mxu2 %v1606_v63  ;;  %1706 = vmatpush.msrb.mxu3 %v1622_v0  ;;  %v1722_v63 = vld [vmem:[%s2786_s9] sm:$0xff]  ;;  %v1775_v0 = vld [vmem:[%s2788_s11 + $0x78] sm:$0xff] }
 0x25c   : > { %1747 = vmatpush.msrb.mxu0 %v1729_v46  ;;  %1777 = vmatpush.msrb.mxu1 %v1775_v0 }
 0x25d   : > { %1684 = vmatpush.msrb.mxu2 %v1605_v1  ;;  %1707 = vmatpush.msrb.mxu3 %v1621_v4  ;;  %v1774_v1 = vld [vmem:[%s2788_s11 + $0x70] sm:$0xff]  ;;  %v1771_v4 = vld [vmem:[%s2788_s11 + $0x58] sm:$0xff] }
 0x25e   : > { %1748 = vmatpush.msrb.mxu0 %v1728_v49  ;;  %1778 = vmatpush.msrb.mxu1 %v1774_v1 }
 0x25f   : > { %1685 = vmatpush.msrb.mxu2 %v1604_v7  ;;  %1708 = vmatpush.msrb.mxu3 %v1620_v8  ;;  %v1768_v7 = vld [vmem:[%s2788_s11 + $0x40] sm:$0xff]  ;;  %v1767_v8 = vld [vmem:[%s2788_s11 + $0x38] sm:$0xff] }
 0x260   : > { %1749 = vmatpush.msrb.mxu0 %v1727_v58  ;;  %1779 = vmatpush.msrb.mxu1 %v1773_v2 }
 0x261   : > { %1686 = vmatpush.msrb.mxu2 %v1603_v10  ;;  %1709 = vmatpush.msrb.mxu3 %v1619_v14  ;;  %v1629_v10 = vld [vmem:[%s2785_s8] sm:$0x1] }
 0x262   : > { %1750 = vmatpush.msrb.mxu0 %v1726_v59  ;;  %1780 = vmatpush.msrb.mxu1 %v1772_v3 }
 0x263   : > { %1687 = vmatpush.msrb.mxu2 %v1602_v13  ;;  %1710 = vmatpush.msrb.mxu3 %v1618_v16  ;;  %v1765_v13 = vld [vmem:[%s2788_s11 + $0x28] sm:$0xff]  ;;  %v1763_v16 = vld [vmem:[%s2788_s11 + $0x18] sm:$0xff] }
 0x264   : > { %1751 = vmatpush.msrb.mxu0 %v1725_v60  ;;  %1781 = vmatpush.msrb.mxu1 %v1771_v4 }
 0x265   : > { %1688 = vmatpush.msrb.mxu2 %v1601_v17  ;;  %1711 = vmatpush.msrb.mxu3 %v1617_v20 }
 0x266   : > { %1752 = vmatpush.msrb.mxu0 %v1724_v61  ;;  %1782 = vmatpush.msrb.mxu1 %v1770_v5 }
 0x267   : > { %1689 = vmatpush.msrb.mxu2 %v1600_v23  ;;  %1712 = vmatpush.msrb.mxu3 %v1616_v24  ;;  %v1762_v23 = vld [vmem:[%s2788_s11 + $0x10] sm:$0xff]  ;;  %v1761_v24 = vld [vmem:[%s2788_s11 + $0x8] sm:$0xff] }
 0x268   : > { %1753 = vmatpush.msrb.mxu0 %v1723_v62  ;;  %1783 = vmatpush.msrb.mxu1 %v1769_v6 }
 0x269   : > { %1690 = vmatpush.msrb.mxu2 %v1599_v27  ;;  %1713 = vmatpush.msrb.mxu3 %v1615_v28 }
 0x26a   : > { %1754 = vmatpush.msrb.mxu0 %v1722_v63  ;;  %1784 = vmatpush.msrb.mxu1 %v1768_v7 }
 0x26b   : > { %1691 = vmatpush.msrb.mxu2 %v1598_v31  ;;  %1714 = vmatpush.msrb.mxu3 %v1614_v33 }
 0x26c   : > { %1785 = vmatpush.msrb.mxu1 %v1767_v8 }
 0x26d   : > { %1692 = vmatpush.msrb.mxu2 %v1597_v32  ;;  %1715 = vmatpush.msrb.mxu3 %v1613_v36 }
 0x26e   : > { %1786 = vmatpush.msrb.mxu1 %v1766_v9 }
 0x270   : > { %1787 = vmatpush.msrb.mxu1 %v1765_v13 }
 0x272   : > { %1788 = vmatpush.msrb.mxu1 %v1764_v15 }
 0x274   : > { %1789 = vmatpush.msrb.mxu1 %v1763_v16 }
 0x276   : > { %1790 = vmatpush.msrb.mxu1 %v1762_v23 }
 0x278   : > { %1791 = vmatpush.msrb.mxu1 %v1761_v24 }
 0x27a   : > { %1792 = vmatpush.msrb.mxu1 %v1760_v25 }
 0x2cf   : > { %v1494_v47 = vpop.f32.mrf.mxu2  ;;  %v1514_v48 = vpop.f32.mrf.mxu3 }
 0x2d7   : > { %v1539_v50 = vpop.f32.mrf.mxu2  ;;  %v1559_v51 = vpop.f32.mrf.mxu3 }
 0x2d8   : > { %v1562_v52 = vmax.f32 %v1494_v47, %v1539_v50  ;;  %v1563_v53 = vmax.f32 %v1514_v48, %v1559_v51 }
 0x2da   : > { %v1564_v54 = vmax.f32 %v1562_v52, %v1563_v53 }
 0x2dc   : > { %v1675_v55 = vrot.slane %v1564_v54, 2  ;;  %1646 = vmatmul.f32.vlgmr.msra.gmra.mxu0 %v1564_v54  ;;  %v1698_v56 = vrot.slane %v1564_v54, 3  ;;  %v1652_v57 = vrot.slane %v1564_v54, 1 }
 0x2de   : > { %1693 = vmatmul.f32.vlgmr.msrb.gmra.mxu2 %v1675_v55  ;;  %1716 = vmatmul.f32.vlgmr.msrb.gmra.mxu3 %v1698_v56 }
 0x2df   : > { %1670 = vmatmul.f32.vlgmr.msra.gmra.mxu1 %v1652_v57 }
 0x359   : > { %v1647_v11 = vpop.f32.mrf.mxu0 }
 0x35a   : > { %v1650_v14 = vadd.f32 %v1647_v11, %v1629_v10 }
 0x35c   : > { %v1671_v12 = vpop.f32.mrf.mxu1 }
 0x35d   : > { %v1674_v17 = vadd.f32 %v1671_v12, %v1650_v14 }
 0x361   : > { %v1694_v18 = vpop.f32.mrf.mxu2  ;;  %v1717_v20 = vpop.f32.mrf.mxu3 }
 0x362   : > { %v1697_v19 = vadd.f32 %v1694_v18, %v1674_v17 }
 0x364   : > { %v1720_v21 = vadd.f32 %v1717_v20, %v1697_v19 }
 0x366   : > { %v1721_v22 = vmax.f32 %v1720_v21, 0.0 }
 0x368   : > { %1755 = vmatmul.f32.vlgmr.msrb.gmra.mxu0 %v1721_v22 }
 0x3e5   : > { %v1756_v27 = vpop.f32.mrf.mxu0 }
 0x3e6   : > { %v1757_v28 = vadd.f32 %v1756_v27, %v1738_v26 }
 0x3e8   : > { %v1759_v29 = vmax.f32 %v1757_v28, 0.0 }
 0x3ea   : > { %1793 = vmatmul.f32.vlgmr.msrb.gmra.mxu1 %v1759_v29 }
 0x467   : > { %v1794_v31 = vpop.f32.mrf.mxu1 }
 0x468   : > { %v1795_v32 = vadd.f32 %v1794_v31, %v1776_v30 }
 0x46a   : > { %1797 = vst [vmem:[%s511_s22] sm:$0x1] %v1795_v32 }
 0x46b   : > { %2269 = shalt.err (!%p2266_p8)
}
 0x46c   : > { %2018 = dma.vmem_to_hbm [thread:$0]  (%p2435_p5), %s1810_s4, 16, %s1812_s27, %s1799_s23  }
 0x46d PF: > { %s2815_s10 = sld [smem:[#allocation18_spill]] }
 0x46e   : > { %s2816_s25 = sld [smem:[#allocation16_spill]] }
 0x473   : > { %p2050_p9 = scmp.ge.s32.totalorder %s2815_s10, 2 }
 0x474   : > { %s1823_s18 = sand.u32 1, %s2816_s25  }
 0x475   : > { %p2037_p10 = pnand %p2050_p9, %p2439_p6  ;;  %s1824_s20 = scalar_lea.sflag [#allocation4], %s1823_s18 }
 0x477   : > { %p2038_p11 = pneg %p2037_p10 }
 0x479   : > { %2299 = dma.done.wait (%p2038_p11), %s1824_s20, 16  }
 0x47a   : > { %2301 = vsyncadd (%p2038_p11), %s1824_s20, 4294967280  ;;  %s2818_s28 = sld [smem:[#allocation19_spill]]  ;;  %s2821_s25 = smov %s2308_s26 }
 0x47b   : > { %s2819_s21 = sld [smem:[#allocation17_spill]] }
 0x47c   : > { %s2820_s27 = sld [smem:[#allocation20_spill]] }
 0x480   : > { %p26_p12 = scmp.ge.s32.totalorder %s2818_s28, 4  }
 0x481   : > { %s2822_s26 = smov %s2819_s21 }
 0x482   :  { %28 = sbr.rel (!%p26_p12) target bundleno = 9 (0x9), region = 138 }
 0x487   :  { %1829 = vsyncpa [#allocation3], 1 }
 0x488   :  { %1831 = vsyncpa [#allocation3 + $0x1], 1 }
 0x489   :  { %1832 = vsyncpa [#allocation6], 1 }
 0x48a   :  { %1833 = vsyncpa [#allocation9], 1 }
 0x48b   :  { %1834 = vsyncpa [#allocation4], 1 }
 0x48c   :  { %1836 = vsyncpa [#allocation4 + $0x1], 1 }

</bundles_post_ra>
